<compile_context>
chip_gen: v7x
topology: tpu7x:2x2x1
jax: 0.10.0
libtpu: 0.0.40
codegen_flags: <defaults>
</compile_context>

<pallas_src>
import jax
import jax.numpy as jnp
from jax.experimental import pallas as pl
from jax.experimental.pallas import tpu as pltpu

INPUT_DIM = 1
HIDDEN_DIM = 32
NUM_LAYERS = 2
OUTPUT_DIM = 1
H = HIDDEN_DIM
G = 128      # lane-aligned per-gate block width (HIDDEN_DIM padded to 128 lanes)
NBLK = 7     # fused output blocks: 3 layer-0 (r,z,n_hh) + 4 layer-1 (r,z,n_ih,n_hh)


def _sigmoid(v):
    # sigmoid(x) == 0.5 * (tanh(x/2) + 1): a single EUP (tanh) push per gate.
    return 0.5 * jnp.tanh(0.5 * v) + 0.5


def gru_kernel(wc_ref, c_ref, out_ref, wf_ref, gi0_ref):
    """wc_ref : (64, 7*128)   compact fused weights (rows 0:32 multiply h0, rows 32:64 multiply h1).
    c_ref  : (8+T*B, 512)   small-constant slab + packed input x (lane 0 of rows 8:).
    out_ref: (B, 1)         fc(h1 at last step).
    wf_ref : (128, 7*128)   VMEM scratch: zero-padded fused weight (K = 128 lanes of [h0|h1]).
    gi0_ref: (T*B, 3*128)   VMEM scratch: hoisted layer-0 input projection for every step.
    """
    B = out_ref.shape[0]
    TB = gi0_ref.shape[0]
    T = TB // B
    G3 = 3 * G

    # --- One-time: expand compact weights into the (128, 896) fused matrix.
    #     Rows 64:128 multiply lanes of [h0|h1] that are provably zero, but the
    #     scratch itself is uninitialized, so they must be zeroed explicitly.
    wf_ref[0:2 * H, :] = wc_ref[...]
    wf_ref[2 * H:G, :] = jnp.zeros((G - 2 * H, NBLK * G), jnp.float32)
    wf = wf_ref[...]

    c = c_ref[...]

    # --- Hoisted broadcasts of per-step constants (JAX does not CSE broadcasts).
    bhn0 = jnp.broadcast_to(c[2:3, 0:G], (B, G))          # layer-0 b_hn (inside r*(...))
    b1 = jnp.broadcast_to(c[3:4, :], (B, 4 * G))          # layer-1 bias slab (offset 32 / block)
    fcw = c[4:5, 0:G]                                     # (1, G) fc weight (lanes 32:64)
    fcb = c[5:6, 0:1]                                     # (1, 1) fc bias

    # --- Hoisted, vectorized layer-0 input projection for ALL timesteps,
    #     parked in VMEM and re-read per step (keeps vreg pressure low).
    x_col = c[8:8 + TB, 0:1]                              # (T*B, 1) packed input
    wi0 = jnp.broadcast_to(c[0:1, 0:G3], (TB, G3))
    bi0 = jnp.broadcast_to(c[1:2, 0:G3], (TB, G3))
    gi0_ref[...] = x_col * wi0 + bi0

    # --- State: h0 real in lanes 0:32, h1 real in lanes 32:64, pad lanes stay 0,
    #     so the fused-matmul LHS is simply h0 + h1.
    h0 = jnp.zeros((B, G), jnp.float32)
    h1 = jnp.zeros((B, G), jnp.float32)
    gh0 = jnp.zeros((B, G3), jnp.float32)                 # W_hh0 @ h0 (h0 == 0 at t == 0)

    # --- Fully unrolled recurrence: one MXU push + 6 EUP pushes per step.
    for t in range(T):
        gi0 = gi0_ref[t * B:(t + 1) * B, :]               # (B, 3G)

        # Layer 0 (uses the hidden projection produced by the PREVIOUS fused matmul).
        r0 = _sigmoid(gi0[:, 0:G] + gh0[:, 0:G])
        z0 = _sigmoid(gi0[:, G:2 * G] + gh0[:, G:2 * G])
        n0 = jnp.tanh(gi0[:, 2 * G:G3] + r0 * (gh0[:, 2 * G:G3] + bhn0))
        h0 = (1.0 - z0) * n0 + z0 * h0

        # Fused matmul: blocks 0..2 -> layer-0 hidden projection for step t+1,
        # blocks 3..6 -> layer-1 gate pre-activations for step t.
        g = jnp.dot(h0 + h1, wf, preferred_element_type=jnp.float32)   # (B, 7G)
        gh0 = g[:, 0:G3]

        # Layer 1 (real lanes at offset 32 inside each 128-lane block).
        g1 = g[:, G3:NBLK * G] + b1
        r1 = _sigmoid(g1[:, 0:G])
        z1 = _sigmoid(g1[:, G:2 * G])
        n1 = jnp.tanh(g1[:, 2 * G:3 * G] + r1 * g1[:, 3 * G:4 * G])
        h1 = (1.0 - z1) * n1 + z1 * h1

    # fc(out[:, -1, :]) == fc(h1 at last step); pad lanes of fcw / h1 are 0.
    out_ref[...] = jnp.sum(h1 * fcw, axis=-1, keepdims=True) + fcb


def pack_inputs(p, x):
    """Pack PyTorch-layout GRU/Linear params and the (B, T, 1) input into the
    kernel's two lane-aligned slabs (compact fused weights + constant/x slab)."""
    f32 = jnp.float32
    B, T, _ = x.shape
    TB = T * B

    def gate_t(w, g):   # (3H, in) -> (in, H) block for gate g (r=0, z=1, n=2), transposed
        return jnp.transpose(w[g * H:(g + 1) * H, :]).astype(f32)

    # Compact fused weights (64, 7*128): rows 0:32 multiply h0, rows 32:64 multiply h1.
    # Column blocks: [gh0_r | gh0_z | gh0_n | g1_r | g1_z | g1_n_ih | g1_n_hh].
    # Layer-0 outputs sit at lane offset 0 of their block, layer-1 outputs at offset 32.
    wc = jnp.zeros((2 * H, NBLK * G), f32)
    for g in range(3):
        wc = wc.at[0:H, g * G:g * G + H].set(gate_t(p["weight_hh_l0"], g))
    for g in (0, 1):
        wc = wc.at[0:H, (3 + g) * G + H:(3 + g) * G + 2 * H].set(gate_t(p["weight_ih_l1"], g))
        wc = wc.at[H:2 * H, (3 + g) * G + H:(3 + g) * G + 2 * H].set(gate_t(p["weight_hh_l1"], g))
    wc = wc.at[0:H, 5 * G + H:5 * G + 2 * H].set(gate_t(p["weight_ih_l1"], 2))
    wc = wc.at[H:2 * H, 6 * G + H:6 * G + 2 * H].set(gate_t(p["weight_hh_l1"], 2))

    # Small-constant slab + packed x (one DMA for everything but the weight matrix).
    c = jnp.zeros((8 + TB, 4 * G), f32)
    for g in range(3):
        c = c.at[0, g * G:g * G + H].set(p["weight_ih_l0"][g * H:(g + 1) * H, 0])
        bg = p["bias_ih_l0"][g * H:(g + 1) * H]
        if g < 2:            # r, z: both biases fold into the hoisted input projection
            bg = bg + p["bias_hh_l0"][g * H:(g + 1) * H]
        c = c.at[1, g * G:g * G + H].set(bg)
    c = c.at[2, 0:H].set(p["bias_hh_l0"][2 * H:3 * H])            # layer-0 b_hn
    b1_blocks = (p["bias_ih_l1"][0:H] + p["bias_hh_l1"][0:H],
                 p["bias_ih_l1"][H:2 * H] + p["bias_hh_l1"][H:2 * H],
                 p["bias_ih_l1"][2 * H:3 * H],
                 p["bias_hh_l1"][2 * H:3 * H])
    for g in range(4):
        c = c.at[3, g * G + H:g * G + 2 * H].set(b1_blocks[g])    # layer-1 biases (offset 32)
    c = c.at[4, H:2 * H].set(p["fc_weight"][0, :])                # fc weight (offset 32)
    c = c.at[5, 0].set(p["fc_bias"][0])
    # Input x, time-major flattened: row 8 + t*B + b holds x[b, t, 0] in lane 0.
    c = c.at[8:8 + TB, 0].set(jnp.transpose(x[:, :, 0]).reshape(TB).astype(f32))
    return wc, c


def gru_model_forward(x, params):
    """x: (B, T, INPUT_DIM) float32, batch-first (as in the PyTorch module)."""
    B, T, I = x.shape
    assert I == INPUT_DIM
    wc, c = pack_inputs(params, x)

    vmem = pl.BlockSpec(memory_space=pltpu.MemorySpace.VMEM)
    return pl.pallas_call(
        gru_kernel,
        out_shape=jax.ShapeDtypeStruct((B, OUTPUT_DIM), jnp.float32),
        in_specs=[vmem, vmem],                   # 2 inputs -> 2 specs
        out_specs=vmem,
        scratch_shapes=[pltpu.VMEM((G, NBLK * G), jnp.float32),      # zero-padded fused weight
                        pltpu.VMEM((T * B, 3 * G), jnp.float32)],    # hoisted gi0
    )(wc, c)


def init_params(key):
    """PyTorch nn.GRU / nn.Linear shapes, U(-1/sqrt(H), 1/sqrt(H)) init."""
    Hd, I, O = HIDDEN_DIM, INPUT_DIM, OUTPUT_DIM
    bound = 1.0 / float(Hd) ** 0.5
    ks = jax.random.split(key, 10)
    u = lambda k, shape: jax.random.uniform(k, shape, jnp.float32, -bound, bound)
    return {
        "weight_ih_l0": u(ks[0], (3 * Hd, I)),
        "weight_hh_l0": u(ks[1], (3 * Hd, Hd)),
        "bias_ih_l0":   u(ks[2], (3 * Hd,)),
        "bias_hh_l0":   u(ks[3], (3 * Hd,)),
        "weight_ih_l1": u(ks[4], (3 * Hd, Hd)),
        "weight_hh_l1": u(ks[5], (3 * Hd, Hd)),
        "bias_ih_l1":   u(ks[6], (3 * Hd,)),
        "bias_hh_l1":   u(ks[7], (3 * Hd,)),
        "fc_weight":    u(ks[8], (O, Hd)),
        "fc_bias":      u(ks[9], (O,)),
    }


def gru_model_reference(x, params):
    """Pure-JAX reference with nn.GRU semantics (gate order r,z,n; b_hn inside r*(...))."""
    B, T, _ = x.shape
    Hd = HIDDEN_DIM
    hp = jax.lax.Precision.HIGHEST

    def cell(inp, h, w_ih, w_hh, b_ih, b_hh):
        gi = jnp.dot(inp, w_ih.T, precision=hp) + b_ih
        gh = jnp.dot(h, w_hh.T, precision=hp) + b_hh
        r = jax.nn.sigmoid(gi[:, 0:Hd] + gh[:, 0:Hd])
        z = jax.nn.sigmoid(gi[:, Hd:2 * Hd] + gh[:, Hd:2 * Hd])
        n = jnp.tanh(gi[:, 2 * Hd:3 * Hd] + r * gh[:, 2 * Hd:3 * Hd])
        return (1.0 - z) * n + z * h

    h0 = jnp.zeros((B, Hd), jnp.float32)
    h1 = jnp.zeros((B, Hd), jnp.float32)
    for t in range(T):
        h0 = cell(x[:, t, :], h0, params["weight_ih_l0"], params["weight_hh_l0"],
                  params["bias_ih_l0"], params["bias_hh_l0"])
        h1 = cell(h0, h1, params["weight_ih_l1"], params["weight_hh_l1"],
                  params["bias_ih_l1"], params["bias_hh_l1"])
    return jnp.dot(h1, params["fc_weight"].T, precision=hp) + params["fc_bias"]


if __name__ == "__main__":
    key = jax.random.PRNGKey(0)
    k_x, k_p = jax.random.split(key)

    B, T = 2, 8
    x = jax.random.normal(k_x, (B, T, INPUT_DIM), jnp.float32)
    params = init_params(k_p)

    out = jax.block_until_ready(gru_model_forward(x, params))
    ref = gru_model_reference(x, params)

    assert out.shape == (B, OUTPUT_DIM)
    assert jnp.allclose(out, ref, atol=1e-4, rtol=1e-4), (out, ref)
    print("KERNEL_OK")
</pallas_src>

<mosaic_0001>
module attributes {stable_mosaic.version = 11 : i64} {
  func.func @gru_kernel(%arg0: memref<64x896xf32, #tpu.memory_space<vmem>>, %arg1: memref<24x512xf32, #tpu.memory_space<vmem>>, %arg2: memref<2x1xf32, #tpu.memory_space<vmem>>, %arg3: memref<128x896xf32, #tpu.memory_space<vmem>>, %arg4: memref<16x384xf32, #tpu.memory_space<vmem>>) attributes {dimension_semantics = [], scalar_prefetch = 0 : i64, scratch_operands = 2 : i64, tpu.core_type = #tpu.core_type<tc>} {
    %c0 = arith.constant 0 : index
    %c0_0 = arith.constant 0 : index
    %0 = vector.load %arg0[%c0, %c0_0] : memref<64x896xf32, #tpu.memory_space<vmem>>, vector<64x896xf32>
    %c0_1 = arith.constant 0 : index
    %c0_2 = arith.constant 0 : index
    %1 = vector.load %arg3[%c0_1, %c0_2] : memref<128x896xf32, #tpu.memory_space<vmem>>, vector<64x896xf32>
    tpu.vector_store %arg3[%c0_1, %c0_2], %0 {strides = array<i32>} : memref<128x896xf32, #tpu.memory_space<vmem>>, vector<64x896xf32>,
    %cst = arith.constant 0.000000e+00 : f32
    %2 = vector.broadcast %cst : f32 to vector<64x896xf32>
    %c64 = arith.constant 64 : index
    %c0_3 = arith.constant 0 : index
    %3 = vector.load %arg3[%c64, %c0_3] : memref<128x896xf32, #tpu.memory_space<vmem>>, vector<64x896xf32>
    tpu.vector_store %arg3[%c64, %c0_3], %2 {strides = array<i32>} : memref<128x896xf32, #tpu.memory_space<vmem>>, vector<64x896xf32>,
    %c0_4 = arith.constant 0 : index
    %c0_5 = arith.constant 0 : index
    %4 = vector.load %arg3[%c0_4, %c0_5] : memref<128x896xf32, #tpu.memory_space<vmem>>, vector<128x896xf32>
    %c0_6 = arith.constant 0 : index
    %c0_7 = arith.constant 0 : index
    %5 = vector.load %arg1[%c0_6, %c0_7] : memref<24x512xf32, #tpu.memory_space<vmem>>, vector<24x512xf32>
    %6 = vector.extract_strided_slice %5 {offsets = [2, 0], sizes = [1, 128], strides = [1, 1]} : vector<24x512xf32> to vector<1x128xf32>
    %7 = vector.shape_cast %6 : vector<1x128xf32> to vector<1x128xf32>
    %8 = vector.broadcast %7 : vector<1x128xf32> to vector<2x128xf32>
    %9 = vector.extract_strided_slice %5 {offsets = [3, 0], sizes = [1, 512], strides = [1, 1]} : vector<24x512xf32> to vector<1x512xf32>
    %10 = vector.shape_cast %9 : vector<1x512xf32> to vector<1x512xf32>
    %11 = vector.broadcast %10 : vector<1x512xf32> to vector<2x512xf32>
    %12 = vector.extract_strided_slice %5 {offsets = [4, 0], sizes = [1, 128], strides = [1, 1]} : vector<24x512xf32> to vector<1x128xf32>
    %13 = vector.extract_strided_slice %5 {offsets = [5, 0], sizes = [1, 1], strides = [1, 1]} : vector<24x512xf32> to vector<1x1xf32>
    %14 = vector.extract_strided_slice %5 {offsets = [8, 0], sizes = [16, 1], strides = [1, 1]} : vector<24x512xf32> to vector<16x1xf32>
    %15 = vector.extract_strided_slice %5 {offsets = [0, 0], sizes = [1, 384], strides = [1, 1]} : vector<24x512xf32> to vector<1x384xf32>
    %16 = vector.shape_cast %15 : vector<1x384xf32> to vector<1x384xf32>
    %17 = vector.broadcast %16 : vector<1x384xf32> to vector<16x384xf32>
    %18 = vector.extract_strided_slice %5 {offsets = [1, 0], sizes = [1, 384], strides = [1, 1]} : vector<24x512xf32> to vector<1x384xf32>
    %19 = vector.shape_cast %18 : vector<1x384xf32> to vector<1x384xf32>
    %20 = vector.broadcast %19 : vector<1x384xf32> to vector<16x384xf32>
    %21 = vector.broadcast %14 : vector<16x1xf32> to vector<16x384xf32>
    %22 = arith.mulf %21, %17 : vector<16x384xf32>
    %23 = arith.addf %22, %20 : vector<16x384xf32>
    %c0_8 = arith.constant 0 : index
    %c0_9 = arith.constant 0 : index
    %24 = vector.load %arg4[%c0_8, %c0_9] : memref<16x384xf32, #tpu.memory_space<vmem>>, vector<16x384xf32>
    tpu.vector_store %arg4[%c0_8, %c0_9], %23 {strides = array<i32>} : memref<16x384xf32, #tpu.memory_space<vmem>>, vector<16x384xf32>,
    %cst_10 = arith.constant 0.000000e+00 : f32
    %25 = vector.broadcast %cst_10 : f32 to vector<2x128xf32>
    %cst_11 = arith.constant 0.000000e+00 : f32
    %26 = vector.broadcast %cst_11 : f32 to vector<2x128xf32>
    %cst_12 = arith.constant 0.000000e+00 : f32
    %27 = vector.broadcast %cst_12 : f32 to vector<2x384xf32>
    %c0_13 = arith.constant 0 : index
    %c0_14 = arith.constant 0 : index
    %28 = vector.load %arg4[%c0_13, %c0_14] : memref<16x384xf32, #tpu.memory_space<vmem>>, vector<2x384xf32>
    %29 = vector.extract_strided_slice %28 {offsets = [0, 0], sizes = [2, 128], strides = [1, 1]} : vector<2x384xf32> to vector<2x128xf32>
    %30 = vector.extract_strided_slice %27 {offsets = [0, 0], sizes = [2, 128], strides = [1, 1]} : vector<2x384xf32> to vector<2x128xf32>
    %31 = arith.addf %29, %30 : vector<2x128xf32>
    %cst_15 = arith.constant 5.000000e-01 : f32
    %32 = vector.broadcast %cst_15 : f32 to vector<2x128xf32>
    %33 = arith.mulf %32, %31 : vector<2x128xf32>
    %34 = math.tanh %33 : vector<2x128xf32>
    %cst_16 = arith.constant 5.000000e-01 : f32
    %35 = vector.broadcast %cst_16 : f32 to vector<2x128xf32>
    %36 = arith.mulf %35, %34 : vector<2x128xf32>
    %cst_17 = arith.constant 5.000000e-01 : f32
    %37 = vector.broadcast %cst_17 : f32 to vector<2x128xf32>
    %38 = arith.addf %36, %37 : vector<2x128xf32>
    %39 = vector.extract_strided_slice %28 {offsets = [0, 128], sizes = [2, 128], strides = [1, 1]} : vector<2x384xf32> to vector<2x128xf32>
    %40 = vector.extract_strided_slice %27 {offsets = [0, 128], sizes = [2, 128], strides = [1, 1]} : vector<2x384xf32> to vector<2x128xf32>
    %41 = arith.addf %39, %40 : vector<2x128xf32>
    %cst_18 = arith.constant 5.000000e-01 : f32
    %42 = vector.broadcast %cst_18 : f32 to vector<2x128xf32>
    %43 = arith.mulf %42, %41 : vector<2x128xf32>
    %44 = math.tanh %43 : vector<2x128xf32>
    %cst_19 = arith.constant 5.000000e-01 : f32
    %45 = vector.broadcast %cst_19 : f32 to vector<2x128xf32>
    %46 = arith.mulf %45, %44 : vector<2x128xf32>
    %cst_20 = arith.constant 5.000000e-01 : f32
    %47 = vector.broadcast %cst_20 : f32 to vector<2x128xf32>
    %48 = arith.addf %46, %47 : vector<2x128xf32>
    %49 = vector.extract_strided_slice %28 {offsets = [0, 256], sizes = [2, 128], strides = [1, 1]} : vector<2x384xf32> to vector<2x128xf32>
    %50 = vector.extract_strided_slice %27 {offsets = [0, 256], sizes = [2, 128], strides = [1, 1]} : vector<2x384xf32> to vector<2x128xf32>
    %51 = arith.addf %50, %8 : vector<2x128xf32>
    %52 = arith.mulf %38, %51 : vector<2x128xf32>
    %53 = arith.addf %49, %52 : vector<2x128xf32>
    %54 = math.tanh %53 : vector<2x128xf32>
    %cst_21 = arith.constant 1.000000e+00 : f32
    %55 = vector.broadcast %cst_21 : f32 to vector<2x128xf32>
    %56 = arith.subf %55, %48 : vector<2x128xf32>
    %57 = arith.mulf %56, %54 : vector<2x128xf32>
    %58 = arith.mulf %48, %25 : vector<2x128xf32>
    %59 = arith.addf %57, %58 : vector<2x128xf32>
    %60 = arith.addf %59, %26 : vector<2x128xf32>
    %cst_22 = arith.constant dense<0.000000e+00> : vector<2x896xf32>
    %61 = tpu.matmul %60, %4, %cst_22 {dimension_numbers = #tpu.dot_dimension_numbers<[1], [0], [0], [1], [0, 0, 1, 1], [], []>} : vector<2x128xf32>, vector<128x896xf32>, vector<2x896xf32> -> vector<2x896xf32>
    %62 = vector.extract_strided_slice %61 {offsets = [0, 0], sizes = [2, 384], strides = [1, 1]} : vector<2x896xf32> to vector<2x384xf32>
    %63 = vector.extract_strided_slice %61 {offsets = [0, 384], sizes = [2, 512], strides = [1, 1]} : vector<2x896xf32> to vector<2x512xf32>
    %64 = arith.addf %63, %11 : vector<2x512xf32>
    %65 = vector.extract_strided_slice %64 {offsets = [0, 0], sizes = [2, 128], strides = [1, 1]} : vector<2x512xf32> to vector<2x128xf32>
    %cst_23 = arith.constant 5.000000e-01 : f32
    %66 = vector.broadcast %cst_23 : f32 to vector<2x128xf32>
    %67 = arith.mulf %66, %65 : vector<2x128xf32>
    %68 = math.tanh %67 : vector<2x128xf32>
    %cst_24 = arith.constant 5.000000e-01 : f32
    %69 = vector.broadcast %cst_24 : f32 to vector<2x128xf32>
    %70 = arith.mulf %69, %68 : vector<2x128xf32>
    %cst_25 = arith.constant 5.000000e-01 : f32
    %71 = vector.broadcast %cst_25 : f32 to vector<2x128xf32>
    %72 = arith.addf %70, %71 : vector<2x128xf32>
    %73 = vector.extract_strided_slice %64 {offsets = [0, 128], sizes = [2, 128], strides = [1, 1]} : vector<2x512xf32> to vector<2x128xf32>
    %cst_26 = arith.constant 5.000000e-01 : f32
    %74 = vector.broadcast %cst_26 : f32 to vector<2x128xf32>
    %75 = arith.mulf %74, %73 : vector<2x128xf32>
    %76 = math.tanh %75 : vector<2x128xf32>
    %cst_27 = arith.constant 5.000000e-01 : f32
    %77 = vector.broadcast %cst_27 : f32 to vector<2x128xf32>
    %78 = arith.mulf %77, %76 : vector<2x128xf32>
    %cst_28 = arith.constant 5.000000e-01 : f32
    %79 = vector.broadcast %cst_28 : f32 to vector<2x128xf32>
    %80 = arith.addf %78, %79 : vector<2x128xf32>
    %81 = vector.extract_strided_slice %64 {offsets = [0, 256], sizes = [2, 128], strides = [1, 1]} : vector<2x512xf32> to vector<2x128xf32>
    %82 = vector.extract_strided_slice %64 {offsets = [0, 384], sizes = [2, 128], strides = [1, 1]} : vector<2x512xf32> to vector<2x128xf32>
    %83 = arith.mulf %72, %82 : vector<2x128xf32>
    %84 = arith.addf %81, %83 : vector<2x128xf32>
    %85 = math.tanh %84 : vector<2x128xf32>
    %cst_29 = arith.constant 1.000000e+00 : f32
    %86 = vector.broadcast %cst_29 : f32 to vector<2x128xf32>
    %87 = arith.subf %86, %80 : vector<2x128xf32>
    %88 = arith.mulf %87, %85 : vector<2x128xf32>
    %89 = arith.mulf %80, %26 : vector<2x128xf32>
    %90 = arith.addf %88, %89 : vector<2x128xf32>
    %c2 = arith.constant 2 : index
    %c0_30 = arith.constant 0 : index
    %91 = vector.load %arg4[%c2, %c0_30] : memref<16x384xf32, #tpu.memory_space<vmem>>, vector<2x384xf32>
    %92 = vector.extract_strided_slice %91 {offsets = [0, 0], sizes = [2, 128], strides = [1, 1]} : vector<2x384xf32> to vector<2x128xf32>
    %93 = vector.extract_strided_slice %62 {offsets = [0, 0], sizes = [2, 128], strides = [1, 1]} : vector<2x384xf32> to vector<2x128xf32>
    %94 = arith.addf %92, %93 : vector<2x128xf32>
    %cst_31 = arith.constant 5.000000e-01 : f32
    %95 = vector.broadcast %cst_31 : f32 to vector<2x128xf32>
    %96 = arith.mulf %95, %94 : vector<2x128xf32>
    %97 = math.tanh %96 : vector<2x128xf32>
    %cst_32 = arith.constant 5.000000e-01 : f32
    %98 = vector.broadcast %cst_32 : f32 to vector<2x128xf32>
    %99 = arith.mulf %98, %97 : vector<2x128xf32>
    %cst_33 = arith.constant 5.000000e-01 : f32
    %100 = vector.broadcast %cst_33 : f32 to vector<2x128xf32>
    %101 = arith.addf %99, %100 : vector<2x128xf32>
    %102 = vector.extract_strided_slice %91 {offsets = [0, 128], sizes = [2, 128], strides = [1, 1]} : vector<2x384xf32> to vector<2x128xf32>
    %103 = vector.extract_strided_slice %62 {offsets = [0, 128], sizes = [2, 128], strides = [1, 1]} : vector<2x384xf32> to vector<2x128xf32>
    %104 = arith.addf %102, %103 : vector<2x128xf32>
    %cst_34 = arith.constant 5.000000e-01 : f32
    %105 = vector.broadcast %cst_34 : f32 to vector<2x128xf32>
    %106 = arith.mulf %105, %104 : vector<2x128xf32>
    %107 = math.tanh %106 : vector<2x128xf32>
    %cst_35 = arith.constant 5.000000e-01 : f32
    %108 = vector.broadcast %cst_35 : f32 to vector<2x128xf32>
    %109 = arith.mulf %108, %107 : vector<2x128xf32>
    %cst_36 = arith.constant 5.000000e-01 : f32
    %110 = vector.broadcast %cst_36 : f32 to vector<2x128xf32>
    %111 = arith.addf %109, %110 : vector<2x128xf32>
    %112 = vector.extract_strided_slice %91 {offsets = [0, 256], sizes = [2, 128], strides = [1, 1]} : vector<2x384xf32> to vector<2x128xf32>
    %113 = vector.extract_strided_slice %62 {offsets = [0, 256], sizes = [2, 128], strides = [1, 1]} : vector<2x384xf32> to vector<2x128xf32>
    %114 = arith.addf %113, %8 : vector<2x128xf32>
    %115 = arith.mulf %101, %114 : vector<2x128xf32>
    %116 = arith.addf %112, %115 : vector<2x128xf32>
    %117 = math.tanh %116 : vector<2x128xf32>
    %cst_37 = arith.constant 1.000000e+00 : f32
    %118 = vector.broadcast %cst_37 : f32 to vector<2x128xf32>
    %119 = arith.subf %118, %111 : vector<2x128xf32>
    %120 = arith.mulf %119, %117 : vector<2x128xf32>
    %121 = arith.mulf %111, %59 : vector<2x128xf32>
    %122 = arith.addf %120, %121 : vector<2x128xf32>
    %123 = arith.addf %122, %90 : vector<2x128xf32>
    %cst_38 = arith.constant dense<0.000000e+00> : vector<2x896xf32>
    %124 = tpu.matmul %123, %4, %cst_38 {dimension_numbers = #tpu.dot_dimension_numbers<[1], [0], [0], [1], [0, 0, 1, 1], [], []>} : vector<2x128xf32>, vector<128x896xf32>, vector<2x896xf32> -> vector<2x896xf32>
    %125 = vector.extract_strided_slice %124 {offsets = [0, 0], sizes = [2, 384], strides = [1, 1]} : vector<2x896xf32> to vector<2x384xf32>
    %126 = vector.extract_strided_slice %124 {offsets = [0, 384], sizes = [2, 512], strides = [1, 1]} : vector<2x896xf32> to vector<2x512xf32>
    %127 = arith.addf %126, %11 : vector<2x512xf32>
    %128 = vector.extract_strided_slice %127 {offsets = [0, 0], sizes = [2, 128], strides = [1, 1]} : vector<2x512xf32> to vector<2x128xf32>
    %cst_39 = arith.constant 5.000000e-01 : f32
    %129 = vector.broadcast %cst_39 : f32 to vector<2x128xf32>
    %130 = arith.mulf %129, %128 : vector<2x128xf32>
    %131 = math.tanh %130 : vector<2x128xf32>
    %cst_40 = arith.constant 5.000000e-01 : f32
    %132 = vector.broadcast %cst_40 : f32 to vector<2x128xf32>
    %133 = arith.mulf %132, %131 : vector<2x128xf32>
    %cst_41 = arith.constant 5.000000e-01 : f32
    %134 = vector.broadcast %cst_41 : f32 to vector<2x128xf32>
    %135 = arith.addf %133, %134 : vector<2x128xf32>
    %136 = vector.extract_strided_slice %127 {offsets = [0, 128], sizes = [2, 128], strides = [1, 1]} : vector<2x512xf32> to vector<2x128xf32>
    %cst_42 = arith.constant 5.000000e-01 : f32
    %137 = vector.broadcast %cst_42 : f32 to vector<2x128xf32>
    %138 = arith.mulf %137, %136 : vector<2x128xf32>
    %139 = math.tanh %138 : vector<2x128xf32>
    %cst_43 = arith.constant 5.000000e-01 : f32
    %140 = vector.broadcast %cst_43 : f32 to vector<2x128xf32>
    %141 = arith.mulf %140, %139 : vector<2x128xf32>
    %cst_44 = arith.constant 5.000000e-01 : f32
    %142 = vector.broadcast %cst_44 : f32 to vector<2x128xf32>
    %143 = arith.addf %141, %142 : vector<2x128xf32>
    %144 = vector.extract_strided_slice %127 {offsets = [0, 256], sizes = [2, 128], strides = [1, 1]} : vector<2x512xf32> to vector<2x128xf32>
    %145 = vector.extract_strided_slice %127 {offsets = [0, 384], sizes = [2, 128], strides = [1, 1]} : vector<2x512xf32> to vector<2x128xf32>
    %146 = arith.mulf %135, %145 : vector<2x128xf32>
    %147 = arith.addf %144, %146 : vector<2x128xf32>
    %148 = math.tanh %147 : vector<2x128xf32>
    %cst_45 = arith.constant 1.000000e+00 : f32
    %149 = vector.broadcast %cst_45 : f32 to vector<2x128xf32>
    %150 = arith.subf %149, %143 : vector<2x128xf32>
    %151 = arith.mulf %150, %148 : vector<2x128xf32>
    %152 = arith.mulf %143, %90 : vector<2x128xf32>
    %153 = arith.addf %151, %152 : vector<2x128xf32>
    %c4 = arith.constant 4 : index
    %c0_46 = arith.constant 0 : index
    %154 = vector.load %arg4[%c4, %c0_46] : memref<16x384xf32, #tpu.memory_space<vmem>>, vector<2x384xf32>
    %155 = vector.extract_strided_slice %154 {offsets = [0, 0], sizes = [2, 128], strides = [1, 1]} : vector<2x384xf32> to vector<2x128xf32>
    %156 = vector.extract_strided_slice %125 {offsets = [0, 0], sizes = [2, 128], strides = [1, 1]} : vector<2x384xf32> to vector<2x128xf32>
    %157 = arith.addf %155, %156 : vector<2x128xf32>
    %cst_47 = arith.constant 5.000000e-01 : f32
    %158 = vector.broadcast %cst_47 : f32 to vector<2x128xf32>
    %159 = arith.mulf %158, %157 : vector<2x128xf32>
    %160 = math.tanh %159 : vector<2x128xf32>
    %cst_48 = arith.constant 5.000000e-01 : f32
    %161 = vector.broadcast %cst_48 : f32 to vector<2x128xf32>
    %162 = arith.mulf %161, %160 : vector<2x128xf32>
    %cst_49 = arith.constant 5.000000e-01 : f32
    %163 = vector.broadcast %cst_49 : f32 to vector<2x128xf32>
    %164 = arith.addf %162, %163 : vector<2x128xf32>
    %165 = vector.extract_strided_slice %154 {offsets = [0, 128], sizes = [2, 128], strides = [1, 1]} : vector<2x384xf32> to vector<2x128xf32>
    %166 = vector.extract_strided_slice %125 {offsets = [0, 128], sizes = [2, 128], strides = [1, 1]} : vector<2x384xf32> to vector<2x128xf32>
    %167 = arith.addf %165, %166 : vector<2x128xf32>
    %cst_50 = arith.constant 5.000000e-01 : f32
    %168 = vector.broadcast %cst_50 : f32 to vector<2x128xf32>
    %169 = arith.mulf %168, %167 : vector<2x128xf32>
    %170 = math.tanh %169 : vector<2x128xf32>
    %cst_51 = arith.constant 5.000000e-01 : f32
    %171 = vector.broadcast %cst_51 : f32 to vector<2x128xf32>
    %172 = arith.mulf %171, %170 : vector<2x128xf32>
    %cst_52 = arith.constant 5.000000e-01 : f32
    %173 = vector.broadcast %cst_52 : f32 to vector<2x128xf32>
    %174 = arith.addf %172, %173 : vector<2x128xf32>
    %175 = vector.extract_strided_slice %154 {offsets = [0, 256], sizes = [2, 128], strides = [1, 1]} : vector<2x384xf32> to vector<2x128xf32>
    %176 = vector.extract_strided_slice %125 {offsets = [0, 256], sizes = [2, 128], strides = [1, 1]} : vector<2x384xf32> to vector<2x128xf32>
    %177 = arith.addf %176, %8 : vector<2x128xf32>
    %178 = arith.mulf %164, %177 : vector<2x128xf32>
    %179 = arith.addf %175, %178 : vector<2x128xf32>
    %180 = math.tanh %179 : vector<2x128xf32>
    %cst_53 = arith.constant 1.000000e+00 : f32
    %181 = vector.broadcast %cst_53 : f32 to vector<2x128xf32>
    %182 = arith.subf %181, %174 : vector<2x128xf32>
    %183 = arith.mulf %182, %180 : vector<2x128xf32>
    %184 = arith.mulf %174, %122 : vector<2x128xf32>
    %185 = arith.addf %183, %184 : vector<2x128xf32>
    %186 = arith.addf %185, %153 : vector<2x128xf32>
    %cst_54 = arith.constant dense<0.000000e+00> : vector<2x896xf32>
    %187 = tpu.matmul %186, %4, %cst_54 {dimension_numbers = #tpu.dot_dimension_numbers<[1], [0], [0], [1], [0, 0, 1, 1], [], []>} : vector<2x128xf32>, vector<128x896xf32>, vector<2x896xf32> -> vector<2x896xf32>
    %188 = vector.extract_strided_slice %187 {offsets = [0, 0], sizes = [2, 384], strides = [1, 1]} : vector<2x896xf32> to vector<2x384xf32>
    %189 = vector.extract_strided_slice %187 {offsets = [0, 384], sizes = [2, 512], strides = [1, 1]} : vector<2x896xf32> to vector<2x512xf32>
    %190 = arith.addf %189, %11 : vector<2x512xf32>
    %191 = vector.extract_strided_slice %190 {offsets = [0, 0], sizes = [2, 128], strides = [1, 1]} : vector<2x512xf32> to vector<2x128xf32>
    %cst_55 = arith.constant 5.000000e-01 : f32
    %192 = vector.broadcast %cst_55 : f32 to vector<2x128xf32>
    %193 = arith.mulf %192, %191 : vector<2x128xf32>
    %194 = math.tanh %193 : vector<2x128xf32>
    %cst_56 = arith.constant 5.000000e-01 : f32
    %195 = vector.broadcast %cst_56 : f32 to vector<2x128xf32>
    %196 = arith.mulf %195, %194 : vector<2x128xf32>
    %cst_57 = arith.constant 5.000000e-01 : f32
    %197 = vector.broadcast %cst_57 : f32 to vector<2x128xf32>
    %198 = arith.addf %196, %197 : vector<2x128xf32>
    %199 = vector.extract_strided_slice %190 {offsets = [0, 128], sizes = [2, 128], strides = [1, 1]} : vector<2x512xf32> to vector<2x128xf32>
    %cst_58 = arith.constant 5.000000e-01 : f32
    %200 = vector.broadcast %cst_58 : f32 to vector<2x128xf32>
    %201 = arith.mulf %200, %199 : vector<2x128xf32>
    %202 = math.tanh %201 : vector<2x128xf32>
    %cst_59 = arith.constant 5.000000e-01 : f32
    %203 = vector.broadcast %cst_59 : f32 to vector<2x128xf32>
    %204 = arith.mulf %203, %202 : vector<2x128xf32>
    %cst_60 = arith.constant 5.000000e-01 : f32
    %205 = vector.broadcast %cst_60 : f32 to vector<2x128xf32>
    %206 = arith.addf %204, %205 : vector<2x128xf32>
    %207 = vector.extract_strided_slice %190 {offsets = [0, 256], sizes = [2, 128], strides = [1, 1]} : vector<2x512xf32> to vector<2x128xf32>
    %208 = vector.extract_strided_slice %190 {offsets = [0, 384], sizes = [2, 128], strides = [1, 1]} : vector<2x512xf32> to vector<2x128xf32>
    %209 = arith.mulf %198, %208 : vector<2x128xf32>
    %210 = arith.addf %207, %209 : vector<2x128xf32>
    %211 = math.tanh %210 : vector<2x128xf32>
    %cst_61 = arith.constant 1.000000e+00 : f32
    %212 = vector.broadcast %cst_61 : f32 to vector<2x128xf32>
    %213 = arith.subf %212, %206 : vector<2x128xf32>
    %214 = arith.mulf %213, %211 : vector<2x128xf32>
    %215 = arith.mulf %206, %153 : vector<2x128xf32>
    %216 = arith.addf %214, %215 : vector<2x128xf32>
    %c6 = arith.constant 6 : index
    %c0_62 = arith.constant 0 : index
    %217 = vector.load %arg4[%c6, %c0_62] : memref<16x384xf32, #tpu.memory_space<vmem>>, vector<2x384xf32>
    %218 = vector.extract_strided_slice %217 {offsets = [0, 0], sizes = [2, 128], strides = [1, 1]} : vector<2x384xf32> to vector<2x128xf32>
    %219 = vector.extract_strided_slice %188 {offsets = [0, 0], sizes = [2, 128], strides = [1, 1]} : vector<2x384xf32> to vector<2x128xf32>
    %220 = arith.addf %218, %219 : vector<2x128xf32>
    %cst_63 = arith.constant 5.000000e-01 : f32
    %221 = vector.broadcast %cst_63 : f32 to vector<2x128xf32>
    %222 = arith.mulf %221, %220 : vector<2x128xf32>
    %223 = math.tanh %222 : vector<2x128xf32>
    %cst_64 = arith.constant 5.000000e-01 : f32
    %224 = vector.broadcast %cst_64 : f32 to vector<2x128xf32>
    %225 = arith.mulf %224, %223 : vector<2x128xf32>
    %cst_65 = arith.constant 5.000000e-01 : f32
    %226 = vector.broadcast %cst_65 : f32 to vector<2x128xf32>
    %227 = arith.addf %225, %226 : vector<2x128xf32>
    %228 = vector.extract_strided_slice %217 {offsets = [0, 128], sizes = [2, 128], strides = [1, 1]} : vector<2x384xf32> to vector<2x128xf32>
    %229 = vector.extract_strided_slice %188 {offsets = [0, 128], sizes = [2, 128], strides = [1, 1]} : vector<2x384xf32> to vector<2x128xf32>
    %230 = arith.addf %228, %229 : vector<2x128xf32>
    %cst_66 = arith.constant 5.000000e-01 : f32
    %231 = vector.broadcast %cst_66 : f32 to vector<2x128xf32>
    %232 = arith.mulf %231, %230 : vector<2x128xf32>
    %233 = math.tanh %232 : vector<2x128xf32>
    %cst_67 = arith.constant 5.000000e-01 : f32
    %234 = vector.broadcast %cst_67 : f32 to vector<2x128xf32>
    %235 = arith.mulf %234, %233 : vector<2x128xf32>
    %cst_68 = arith.constant 5.000000e-01 : f32
    %236 = vector.broadcast %cst_68 : f32 to vector<2x128xf32>
    %237 = arith.addf %235, %236 : vector<2x128xf32>
    %238 = vector.extract_strided_slice %217 {offsets = [0, 256], sizes = [2, 128], strides = [1, 1]} : vector<2x384xf32> to vector<2x128xf32>
    %239 = vector.extract_strided_slice %188 {offsets = [0, 256], sizes = [2, 128], strides = [1, 1]} : vector<2x384xf32> to vector<2x128xf32>
    %240 = arith.addf %239, %8 : vector<2x128xf32>
    %241 = arith.mulf %227, %240 : vector<2x128xf32>
    %242 = arith.addf %238, %241 : vector<2x128xf32>
    %243 = math.tanh %242 : vector<2x128xf32>
    %cst_69 = arith.constant 1.000000e+00 : f32
    %244 = vector.broadcast %cst_69 : f32 to vector<2x128xf32>
    %245 = arith.subf %244, %237 : vector<2x128xf32>
    %246 = arith.mulf %245, %243 : vector<2x128xf32>
    %247 = arith.mulf %237, %185 : vector<2x128xf32>
    %248 = arith.addf %246, %247 : vector<2x128xf32>
    %249 = arith.addf %248, %216 : vector<2x128xf32>
    %cst_70 = arith.constant dense<0.000000e+00> : vector<2x896xf32>
    %250 = tpu.matmul %249, %4, %cst_70 {dimension_numbers = #tpu.dot_dimension_numbers<[1], [0], [0], [1], [0, 0, 1, 1], [], []>} : vector<2x128xf32>, vector<128x896xf32>, vector<2x896xf32> -> vector<2x896xf32>
    %251 = vector.extract_strided_slice %250 {offsets = [0, 0], sizes = [2, 384], strides = [1, 1]} : vector<2x896xf32> to vector<2x384xf32>
    %252 = vector.extract_strided_slice %250 {offsets = [0, 384], sizes = [2, 512], strides = [1, 1]} : vector<2x896xf32> to vector<2x512xf32>
    %253 = arith.addf %252, %11 : vector<2x512xf32>
    %254 = vector.extract_strided_slice %253 {offsets = [0, 0], sizes = [2, 128], strides = [1, 1]} : vector<2x512xf32> to vector<2x128xf32>
    %cst_71 = arith.constant 5.000000e-01 : f32
    %255 = vector.broadcast %cst_71 : f32 to vector<2x128xf32>
    %256 = arith.mulf %255, %254 : vector<2x128xf32>
    %257 = math.tanh %256 : vector<2x128xf32>
    %cst_72 = arith.constant 5.000000e-01 : f32
    %258 = vector.broadcast %cst_72 : f32 to vector<2x128xf32>
    %259 = arith.mulf %258, %257 : vector<2x128xf32>
    %cst_73 = arith.constant 5.000000e-01 : f32
    %260 = vector.broadcast %cst_73 : f32 to vector<2x128xf32>
    %261 = arith.addf %259, %260 : vector<2x128xf32>
    %262 = vector.extract_strided_slice %253 {offsets = [0, 128], sizes = [2, 128], strides = [1, 1]} : vector<2x512xf32> to vector<2x128xf32>
    %cst_74 = arith.constant 5.000000e-01 : f32
    %263 = vector.broadcast %cst_74 : f32 to vector<2x128xf32>
    %264 = arith.mulf %263, %262 : vector<2x128xf32>
    %265 = math.tanh %264 : vector<2x128xf32>
    %cst_75 = arith.constant 5.000000e-01 : f32
    %266 = vector.broadcast %cst_75 : f32 to vector<2x128xf32>
    %267 = arith.mulf %266, %265 : vector<2x128xf32>
    %cst_76 = arith.constant 5.000000e-01 : f32
    %268 = vector.broadcast %cst_76 : f32 to vector<2x128xf32>
    %269 = arith.addf %267, %268 : vector<2x128xf32>
    %270 = vector.extract_strided_slice %253 {offsets = [0, 256], sizes = [2, 128], strides = [1, 1]} : vector<2x512xf32> to vector<2x128xf32>
    %271 = vector.extract_strided_slice %253 {offsets = [0, 384], sizes = [2, 128], strides = [1, 1]} : vector<2x512xf32> to vector<2x128xf32>
    %272 = arith.mulf %261, %271 : vector<2x128xf32>
    %273 = arith.addf %270, %272 : vector<2x128xf32>
    %274 = math.tanh %273 : vector<2x128xf32>
    %cst_77 = arith.constant 1.000000e+00 : f32
    %275 = vector.broadcast %cst_77 : f32 to vector<2x128xf32>
    %276 = arith.subf %275, %269 : vector<2x128xf32>
    %277 = arith.mulf %276, %274 : vector<2x128xf32>
    %278 = arith.mulf %269, %216 : vector<2x128xf32>
    %279 = arith.addf %277, %278 : vector<2x128xf32>
    %c8 = arith.constant 8 : index
    %c0_78 = arith.constant 0 : index
    %280 = vector.load %arg4[%c8, %c0_78] : memref<16x384xf32, #tpu.memory_space<vmem>>, vector<2x384xf32>
    %281 = vector.extract_strided_slice %280 {offsets = [0, 0], sizes = [2, 128], strides = [1, 1]} : vector<2x384xf32> to vector<2x128xf32>
    %282 = vector.extract_strided_slice %251 {offsets = [0, 0], sizes = [2, 128], strides = [1, 1]} : vector<2x384xf32> to vector<2x128xf32>
    %283 = arith.addf %281, %282 : vector<2x128xf32>
    %cst_79 = arith.constant 5.000000e-01 : f32
    %284 = vector.broadcast %cst_79 : f32 to vector<2x128xf32>
    %285 = arith.mulf %284, %283 : vector<2x128xf32>
    %286 = math.tanh %285 : vector<2x128xf32>
    %cst_80 = arith.constant 5.000000e-01 : f32
    %287 = vector.broadcast %cst_80 : f32 to vector<2x128xf32>
    %288 = arith.mulf %287, %286 : vector<2x128xf32>
    %cst_81 = arith.constant 5.000000e-01 : f32
    %289 = vector.broadcast %cst_81 : f32 to vector<2x128xf32>
    %290 = arith.addf %288, %289 : vector<2x128xf32>
    %291 = vector.extract_strided_slice %280 {offsets = [0, 128], sizes = [2, 128], strides = [1, 1]} : vector<2x384xf32> to vector<2x128xf32>
    %292 = vector.extract_strided_slice %251 {offsets = [0, 128], sizes = [2, 128], strides = [1, 1]} : vector<2x384xf32> to vector<2x128xf32>
    %293 = arith.addf %291, %292 : vector<2x128xf32>
    %cst_82 = arith.constant 5.000000e-01 : f32
    %294 = vector.broadcast %cst_82 : f32 to vector<2x128xf32>
    %295 = arith.mulf %294, %293 : vector<2x128xf32>
    %296 = math.tanh %295 : vector<2x128xf32>
    %cst_83 = arith.constant 5.000000e-01 : f32
    %297 = vector.broadcast %cst_83 : f32 to vector<2x128xf32>
    %298 = arith.mulf %297, %296 : vector<2x128xf32>
    %cst_84 = arith.constant 5.000000e-01 : f32
    %299 = vector.broadcast %cst_84 : f32 to vector<2x128xf32>
    %300 = arith.addf %298, %299 : vector<2x128xf32>
    %301 = vector.extract_strided_slice %280 {offsets = [0, 256], sizes = [2, 128], strides = [1, 1]} : vector<2x384xf32> to vector<2x128xf32>
    %302 = vector.extract_strided_slice %251 {offsets = [0, 256], sizes = [2, 128], strides = [1, 1]} : vector<2x384xf32> to vector<2x128xf32>
    %303 = arith.addf %302, %8 : vector<2x128xf32>
    %304 = arith.mulf %290, %303 : vector<2x128xf32>
    %305 = arith.addf %301, %304 : vector<2x128xf32>
    %306 = math.tanh %305 : vector<2x128xf32>
    %cst_85 = arith.constant 1.000000e+00 : f32
    %307 = vector.broadcast %cst_85 : f32 to vector<2x128xf32>
    %308 = arith.subf %307, %300 : vector<2x128xf32>
    %309 = arith.mulf %308, %306 : vector<2x128xf32>
    %310 = arith.mulf %300, %248 : vector<2x128xf32>
    %311 = arith.addf %309, %310 : vector<2x128xf32>
    %312 = arith.addf %311, %279 : vector<2x128xf32>
    %cst_86 = arith.constant dense<0.000000e+00> : vector<2x896xf32>
    %313 = tpu.matmul %312, %4, %cst_86 {dimension_numbers = #tpu.dot_dimension_numbers<[1], [0], [0], [1], [0, 0, 1, 1], [], []>} : vector<2x128xf32>, vector<128x896xf32>, vector<2x896xf32> -> vector<2x896xf32>
    %314 = vector.extract_strided_slice %313 {offsets = [0, 0], sizes = [2, 384], strides = [1, 1]} : vector<2x896xf32> to vector<2x384xf32>
    %315 = vector.extract_strided_slice %313 {offsets = [0, 384], sizes = [2, 512], strides = [1, 1]} : vector<2x896xf32> to vector<2x512xf32>
    %316 = arith.addf %315, %11 : vector<2x512xf32>
    %317 = vector.extract_strided_slice %316 {offsets = [0, 0], sizes = [2, 128], strides = [1, 1]} : vector<2x512xf32> to vector<2x128xf32>
    %cst_87 = arith.constant 5.000000e-01 : f32
    %318 = vector.broadcast %cst_87 : f32 to vector<2x128xf32>
    %319 = arith.mulf %318, %317 : vector<2x128xf32>
    %320 = math.tanh %319 : vector<2x128xf32>
    %cst_88 = arith.constant 5.000000e-01 : f32
    %321 = vector.broadcast %cst_88 : f32 to vector<2x128xf32>
    %322 = arith.mulf %321, %320 : vector<2x128xf32>
    %cst_89 = arith.constant 5.000000e-01 : f32
    %323 = vector.broadcast %cst_89 : f32 to vector<2x128xf32>
    %324 = arith.addf %322, %323 : vector<2x128xf32>
    %325 = vector.extract_strided_slice %316 {offsets = [0, 128], sizes = [2, 128], strides = [1, 1]} : vector<2x512xf32> to vector<2x128xf32>
    %cst_90 = arith.constant 5.000000e-01 : f32
    %326 = vector.broadcast %cst_90 : f32 to vector<2x128xf32>
    %327 = arith.mulf %326, %325 : vector<2x128xf32>
    %328 = math.tanh %327 : vector<2x128xf32>
    %cst_91 = arith.constant 5.000000e-01 : f32
    %329 = vector.broadcast %cst_91 : f32 to vector<2x128xf32>
    %330 = arith.mulf %329, %328 : vector<2x128xf32>
    %cst_92 = arith.constant 5.000000e-01 : f32
    %331 = vector.broadcast %cst_92 : f32 to vector<2x128xf32>
    %332 = arith.addf %330, %331 : vector<2x128xf32>
    %333 = vector.extract_strided_slice %316 {offsets = [0, 256], sizes = [2, 128], strides = [1, 1]} : vector<2x512xf32> to vector<2x128xf32>
    %334 = vector.extract_strided_slice %316 {offsets = [0, 384], sizes = [2, 128], strides = [1, 1]} : vector<2x512xf32> to vector<2x128xf32>
    %335 = arith.mulf %324, %334 : vector<2x128xf32>
    %336 = arith.addf %333, %335 : vector<2x128xf32>
    %337 = math.tanh %336 : vector<2x128xf32>
    %cst_93 = arith.constant 1.000000e+00 : f32
    %338 = vector.broadcast %cst_93 : f32 to vector<2x128xf32>
    %339 = arith.subf %338, %332 : vector<2x128xf32>
    %340 = arith.mulf %339, %337 : vector<2x128xf32>
    %341 = arith.mulf %332, %279 : vector<2x128xf32>
    %342 = arith.addf %340, %341 : vector<2x128xf32>
    %c10 = arith.constant 10 : index
    %c0_94 = arith.constant 0 : index
    %343 = vector.load %arg4[%c10, %c0_94] : memref<16x384xf32, #tpu.memory_space<vmem>>, vector<2x384xf32>
    %344 = vector.extract_strided_slice %343 {offsets = [0, 0], sizes = [2, 128], strides = [1, 1]} : vector<2x384xf32> to vector<2x128xf32>
    %345 = vector.extract_strided_slice %314 {offsets = [0, 0], sizes = [2, 128], strides = [1, 1]} : vector<2x384xf32> to vector<2x128xf32>
    %346 = arith.addf %344, %345 : vector<2x128xf32>
    %cst_95 = arith.constant 5.000000e-01 : f32
    %347 = vector.broadcast %cst_95 : f32 to vector<2x128xf32>
    %348 = arith.mulf %347, %346 : vector<2x128xf32>
    %349 = math.tanh %348 : vector<2x128xf32>
    %cst_96 = arith.constant 5.000000e-01 : f32
    %350 = vector.broadcast %cst_96 : f32 to vector<2x128xf32>
    %351 = arith.mulf %350, %349 : vector<2x128xf32>
    %cst_97 = arith.constant 5.000000e-01 : f32
    %352 = vector.broadcast %cst_97 : f32 to vector<2x128xf32>
    %353 = arith.addf %351, %352 : vector<2x128xf32>
    %354 = vector.extract_strided_slice %343 {offsets = [0, 128], sizes = [2, 128], strides = [1, 1]} : vector<2x384xf32> to vector<2x128xf32>
    %355 = vector.extract_strided_slice %314 {offsets = [0, 128], sizes = [2, 128], strides = [1, 1]} : vector<2x384xf32> to vector<2x128xf32>
    %356 = arith.addf %354, %355 : vector<2x128xf32>
    %cst_98 = arith.constant 5.000000e-01 : f32
    %357 = vector.broadcast %cst_98 : f32 to vector<2x128xf32>
    %358 = arith.mulf %357, %356 : vector<2x128xf32>
    %359 = math.tanh %358 : vector<2x128xf32>
    %cst_99 = arith.constant 5.000000e-01 : f32
    %360 = vector.broadcast %cst_99 : f32 to vector<2x128xf32>
    %361 = arith.mulf %360, %359 : vector<2x128xf32>
    %cst_100 = arith.constant 5.000000e-01 : f32
    %362 = vector.broadcast %cst_100 : f32 to vector<2x128xf32>
    %363 = arith.addf %361, %362 : vector<2x128xf32>
    %364 = vector.extract_strided_slice %343 {offsets = [0, 256], sizes = [2, 128], strides = [1, 1]} : vector<2x384xf32> to vector<2x128xf32>
    %365 = vector.extract_strided_slice %314 {offsets = [0, 256], sizes = [2, 128], strides = [1, 1]} : vector<2x384xf32> to vector<2x128xf32>
    %366 = arith.addf %365, %8 : vector<2x128xf32>
    %367 = arith.mulf %353, %366 : vector<2x128xf32>
    %368 = arith.addf %364, %367 : vector<2x128xf32>
    %369 = math.tanh %368 : vector<2x128xf32>
    %cst_101 = arith.constant 1.000000e+00 : f32
    %370 = vector.broadcast %cst_101 : f32 to vector<2x128xf32>
    %371 = arith.subf %370, %363 : vector<2x128xf32>
    %372 = arith.mulf %371, %369 : vector<2x128xf32>
    %373 = arith.mulf %363, %311 : vector<2x128xf32>
    %374 = arith.addf %372, %373 : vector<2x128xf32>
    %375 = arith.addf %374, %342 : vector<2x128xf32>
    %cst_102 = arith.constant dense<0.000000e+00> : vector<2x896xf32>
    %376 = tpu.matmul %375, %4, %cst_102 {dimension_numbers = #tpu.dot_dimension_numbers<[1], [0], [0], [1], [0, 0, 1, 1], [], []>} : vector<2x128xf32>, vector<128x896xf32>, vector<2x896xf32> -> vector<2x896xf32>
    %377 = vector.extract_strided_slice %376 {offsets = [0, 0], sizes = [2, 384], strides = [1, 1]} : vector<2x896xf32> to vector<2x384xf32>
    %378 = vector.extract_strided_slice %376 {offsets = [0, 384], sizes = [2, 512], strides = [1, 1]} : vector<2x896xf32> to vector<2x512xf32>
    %379 = arith.addf %378, %11 : vector<2x512xf32>
    %380 = vector.extract_strided_slice %379 {offsets = [0, 0], sizes = [2, 128], strides = [1, 1]} : vector<2x512xf32> to vector<2x128xf32>
    %cst_103 = arith.constant 5.000000e-01 : f32
    %381 = vector.broadcast %cst_103 : f32 to vector<2x128xf32>
    %382 = arith.mulf %381, %380 : vector<2x128xf32>
    %383 = math.tanh %382 : vector<2x128xf32>
    %cst_104 = arith.constant 5.000000e-01 : f32
    %384 = vector.broadcast %cst_104 : f32 to vector<2x128xf32>
    %385 = arith.mulf %384, %383 : vector<2x128xf32>
    %cst_105 = arith.constant 5.000000e-01 : f32
    %386 = vector.broadcast %cst_105 : f32 to vector<2x128xf32>
    %387 = arith.addf %385, %386 : vector<2x128xf32>
    %388 = vector.extract_strided_slice %379 {offsets = [0, 128], sizes = [2, 128], strides = [1, 1]} : vector<2x512xf32> to vector<2x128xf32>
    %cst_106 = arith.constant 5.000000e-01 : f32
    %389 = vector.broadcast %cst_106 : f32 to vector<2x128xf32>
    %390 = arith.mulf %389, %388 : vector<2x128xf32>
    %391 = math.tanh %390 : vector<2x128xf32>
    %cst_107 = arith.constant 5.000000e-01 : f32
    %392 = vector.broadcast %cst_107 : f32 to vector<2x128xf32>
    %393 = arith.mulf %392, %391 : vector<2x128xf32>
    %cst_108 = arith.constant 5.000000e-01 : f32
    %394 = vector.broadcast %cst_108 : f32 to vector<2x128xf32>
    %395 = arith.addf %393, %394 : vector<2x128xf32>
    %396 = vector.extract_strided_slice %379 {offsets = [0, 256], sizes = [2, 128], strides = [1, 1]} : vector<2x512xf32> to vector<2x128xf32>
    %397 = vector.extract_strided_slice %379 {offsets = [0, 384], sizes = [2, 128], strides = [1, 1]} : vector<2x512xf32> to vector<2x128xf32>
    %398 = arith.mulf %387, %397 : vector<2x128xf32>
    %399 = arith.addf %396, %398 : vector<2x128xf32>
    %400 = math.tanh %399 : vector<2x128xf32>
    %cst_109 = arith.constant 1.000000e+00 : f32
    %401 = vector.broadcast %cst_109 : f32 to vector<2x128xf32>
    %402 = arith.subf %401, %395 : vector<2x128xf32>
    %403 = arith.mulf %402, %400 : vector<2x128xf32>
    %404 = arith.mulf %395, %342 : vector<2x128xf32>
    %405 = arith.addf %403, %404 : vector<2x128xf32>
    %c12 = arith.constant 12 : index
    %c0_110 = arith.constant 0 : index
    %406 = vector.load %arg4[%c12, %c0_110] : memref<16x384xf32, #tpu.memory_space<vmem>>, vector<2x384xf32>
    %407 = vector.extract_strided_slice %406 {offsets = [0, 0], sizes = [2, 128], strides = [1, 1]} : vector<2x384xf32> to vector<2x128xf32>
    %408 = vector.extract_strided_slice %377 {offsets = [0, 0], sizes = [2, 128], strides = [1, 1]} : vector<2x384xf32> to vector<2x128xf32>
    %409 = arith.addf %407, %408 : vector<2x128xf32>
    %cst_111 = arith.constant 5.000000e-01 : f32
    %410 = vector.broadcast %cst_111 : f32 to vector<2x128xf32>
    %411 = arith.mulf %410, %409 : vector<2x128xf32>
    %412 = math.tanh %411 : vector<2x128xf32>
    %cst_112 = arith.constant 5.000000e-01 : f32
    %413 = vector.broadcast %cst_112 : f32 to vector<2x128xf32>
    %414 = arith.mulf %413, %412 : vector<2x128xf32>
    %cst_113 = arith.constant 5.000000e-01 : f32
    %415 = vector.broadcast %cst_113 : f32 to vector<2x128xf32>
    %416 = arith.addf %414, %415 : vector<2x128xf32>
    %417 = vector.extract_strided_slice %406 {offsets = [0, 128], sizes = [2, 128], strides = [1, 1]} : vector<2x384xf32> to vector<2x128xf32>
    %418 = vector.extract_strided_slice %377 {offsets = [0, 128], sizes = [2, 128], strides = [1, 1]} : vector<2x384xf32> to vector<2x128xf32>
    %419 = arith.addf %417, %418 : vector<2x128xf32>
    %cst_114 = arith.constant 5.000000e-01 : f32
    %420 = vector.broadcast %cst_114 : f32 to vector<2x128xf32>
    %421 = arith.mulf %420, %419 : vector<2x128xf32>
    %422 = math.tanh %421 : vector<2x128xf32>
    %cst_115 = arith.constant 5.000000e-01 : f32
    %423 = vector.broadcast %cst_115 : f32 to vector<2x128xf32>
    %424 = arith.mulf %423, %422 : vector<2x128xf32>
    %cst_116 = arith.constant 5.000000e-01 : f32
    %425 = vector.broadcast %cst_116 : f32 to vector<2x128xf32>
    %426 = arith.addf %424, %425 : vector<2x128xf32>
    %427 = vector.extract_strided_slice %406 {offsets = [0, 256], sizes = [2, 128], strides = [1, 1]} : vector<2x384xf32> to vector<2x128xf32>
    %428 = vector.extract_strided_slice %377 {offsets = [0, 256], sizes = [2, 128], strides = [1, 1]} : vector<2x384xf32> to vector<2x128xf32>
    %429 = arith.addf %428, %8 : vector<2x128xf32>
    %430 = arith.mulf %416, %429 : vector<2x128xf32>
    %431 = arith.addf %427, %430 : vector<2x128xf32>
    %432 = math.tanh %431 : vector<2x128xf32>
    %cst_117 = arith.constant 1.000000e+00 : f32
    %433 = vector.broadcast %cst_117 : f32 to vector<2x128xf32>
    %434 = arith.subf %433, %426 : vector<2x128xf32>
    %435 = arith.mulf %434, %432 : vector<2x128xf32>
    %436 = arith.mulf %426, %374 : vector<2x128xf32>
    %437 = arith.addf %435, %436 : vector<2x128xf32>
    %438 = arith.addf %437, %405 : vector<2x128xf32>
    %cst_118 = arith.constant dense<0.000000e+00> : vector<2x896xf32>
    %439 = tpu.matmul %438, %4, %cst_118 {dimension_numbers = #tpu.dot_dimension_numbers<[1], [0], [0], [1], [0, 0, 1, 1], [], []>} : vector<2x128xf32>, vector<128x896xf32>, vector<2x896xf32> -> vector<2x896xf32>
    %440 = vector.extract_strided_slice %439 {offsets = [0, 0], sizes = [2, 384], strides = [1, 1]} : vector<2x896xf32> to vector<2x384xf32>
    %441 = vector.extract_strided_slice %439 {offsets = [0, 384], sizes = [2, 512], strides = [1, 1]} : vector<2x896xf32> to vector<2x512xf32>
    %442 = arith.addf %441, %11 : vector<2x512xf32>
    %443 = vector.extract_strided_slice %442 {offsets = [0, 0], sizes = [2, 128], strides = [1, 1]} : vector<2x512xf32> to vector<2x128xf32>
    %cst_119 = arith.constant 5.000000e-01 : f32
    %444 = vector.broadcast %cst_119 : f32 to vector<2x128xf32>
    %445 = arith.mulf %444, %443 : vector<2x128xf32>
    %446 = math.tanh %445 : vector<2x128xf32>
    %cst_120 = arith.constant 5.000000e-01 : f32
    %447 = vector.broadcast %cst_120 : f32 to vector<2x128xf32>
    %448 = arith.mulf %447, %446 : vector<2x128xf32>
    %cst_121 = arith.constant 5.000000e-01 : f32
    %449 = vector.broadcast %cst_121 : f32 to vector<2x128xf32>
    %450 = arith.addf %448, %449 : vector<2x128xf32>
    %451 = vector.extract_strided_slice %442 {offsets = [0, 128], sizes = [2, 128], strides = [1, 1]} : vector<2x512xf32> to vector<2x128xf32>
    %cst_122 = arith.constant 5.000000e-01 : f32
    %452 = vector.broadcast %cst_122 : f32 to vector<2x128xf32>
    %453 = arith.mulf %452, %451 : vector<2x128xf32>
    %454 = math.tanh %453 : vector<2x128xf32>
    %cst_123 = arith.constant 5.000000e-01 : f32
    %455 = vector.broadcast %cst_123 : f32 to vector<2x128xf32>
    %456 = arith.mulf %455, %454 : vector<2x128xf32>
    %cst_124 = arith.constant 5.000000e-01 : f32
    %457 = vector.broadcast %cst_124 : f32 to vector<2x128xf32>
    %458 = arith.addf %456, %457 : vector<2x128xf32>
    %459 = vector.extract_strided_slice %442 {offsets = [0, 256], sizes = [2, 128], strides = [1, 1]} : vector<2x512xf32> to vector<2x128xf32>
    %460 = vector.extract_strided_slice %442 {offsets = [0, 384], sizes = [2, 128], strides = [1, 1]} : vector<2x512xf32> to vector<2x128xf32>
    %461 = arith.mulf %450, %460 : vector<2x128xf32>
    %462 = arith.addf %459, %461 : vector<2x128xf32>
    %463 = math.tanh %462 : vector<2x128xf32>
    %cst_125 = arith.constant 1.000000e+00 : f32
    %464 = vector.broadcast %cst_125 : f32 to vector<2x128xf32>
    %465 = arith.subf %464, %458 : vector<2x128xf32>
    %466 = arith.mulf %465, %463 : vector<2x128xf32>
    %467 = arith.mulf %458, %405 : vector<2x128xf32>
    %468 = arith.addf %466, %467 : vector<2x128xf32>
    %c14 = arith.constant 14 : index
    %c0_126 = arith.constant 0 : index
    %469 = vector.load %arg4[%c14, %c0_126] : memref<16x384xf32, #tpu.memory_space<vmem>>, vector<2x384xf32>
    %470 = vector.extract_strided_slice %469 {offsets = [0, 0], sizes = [2, 128], strides = [1, 1]} : vector<2x384xf32> to vector<2x128xf32>
    %471 = vector.extract_strided_slice %440 {offsets = [0, 0], sizes = [2, 128], strides = [1, 1]} : vector<2x384xf32> to vector<2x128xf32>
    %472 = arith.addf %470, %471 : vector<2x128xf32>
    %cst_127 = arith.constant 5.000000e-01 : f32
    %473 = vector.broadcast %cst_127 : f32 to vector<2x128xf32>
    %474 = arith.mulf %473, %472 : vector<2x128xf32>
    %475 = math.tanh %474 : vector<2x128xf32>
    %cst_128 = arith.constant 5.000000e-01 : f32
    %476 = vector.broadcast %cst_128 : f32 to vector<2x128xf32>
    %477 = arith.mulf %476, %475 : vector<2x128xf32>
    %cst_129 = arith.constant 5.000000e-01 : f32
    %478 = vector.broadcast %cst_129 : f32 to vector<2x128xf32>
    %479 = arith.addf %477, %478 : vector<2x128xf32>
    %480 = vector.extract_strided_slice %469 {offsets = [0, 128], sizes = [2, 128], strides = [1, 1]} : vector<2x384xf32> to vector<2x128xf32>
    %481 = vector.extract_strided_slice %440 {offsets = [0, 128], sizes = [2, 128], strides = [1, 1]} : vector<2x384xf32> to vector<2x128xf32>
    %482 = arith.addf %480, %481 : vector<2x128xf32>
    %cst_130 = arith.constant 5.000000e-01 : f32
    %483 = vector.broadcast %cst_130 : f32 to vector<2x128xf32>
    %484 = arith.mulf %483, %482 : vector<2x128xf32>
    %485 = math.tanh %484 : vector<2x128xf32>
    %cst_131 = arith.constant 5.000000e-01 : f32
    %486 = vector.broadcast %cst_131 : f32 to vector<2x128xf32>
    %487 = arith.mulf %486, %485 : vector<2x128xf32>
    %cst_132 = arith.constant 5.000000e-01 : f32
    %488 = vector.broadcast %cst_132 : f32 to vector<2x128xf32>
    %489 = arith.addf %487, %488 : vector<2x128xf32>
    %490 = vector.extract_strided_slice %469 {offsets = [0, 256], sizes = [2, 128], strides = [1, 1]} : vector<2x384xf32> to vector<2x128xf32>
    %491 = vector.extract_strided_slice %440 {offsets = [0, 256], sizes = [2, 128], strides = [1, 1]} : vector<2x384xf32> to vector<2x128xf32>
    %492 = arith.addf %491, %8 : vector<2x128xf32>
    %493 = arith.mulf %479, %492 : vector<2x128xf32>
    %494 = arith.addf %490, %493 : vector<2x128xf32>
    %495 = math.tanh %494 : vector<2x128xf32>
    %cst_133 = arith.constant 1.000000e+00 : f32
    %496 = vector.broadcast %cst_133 : f32 to vector<2x128xf32>
    %497 = arith.subf %496, %489 : vector<2x128xf32>
    %498 = arith.mulf %497, %495 : vector<2x128xf32>
    %499 = arith.mulf %489, %437 : vector<2x128xf32>
    %500 = arith.addf %498, %499 : vector<2x128xf32>
    %501 = arith.addf %500, %468 : vector<2x128xf32>
    %cst_134 = arith.constant dense<0.000000e+00> : vector<2x896xf32>
    %502 = tpu.matmul %501, %4, %cst_134 {dimension_numbers = #tpu.dot_dimension_numbers<[1], [0], [0], [1], [0, 0, 1, 1], [], []>} : vector<2x128xf32>, vector<128x896xf32>, vector<2x896xf32> -> vector<2x896xf32>
    %503 = vector.extract_strided_slice %502 {offsets = [0, 384], sizes = [2, 512], strides = [1, 1]} : vector<2x896xf32> to vector<2x512xf32>
    %504 = arith.addf %503, %11 : vector<2x512xf32>
    %505 = vector.extract_strided_slice %504 {offsets = [0, 0], sizes = [2, 128], strides = [1, 1]} : vector<2x512xf32> to vector<2x128xf32>
    %cst_135 = arith.constant 5.000000e-01 : f32
    %506 = vector.broadcast %cst_135 : f32 to vector<2x128xf32>
    %507 = arith.mulf %506, %505 : vector<2x128xf32>
    %508 = math.tanh %507 : vector<2x128xf32>
    %cst_136 = arith.constant 5.000000e-01 : f32
    %509 = vector.broadcast %cst_136 : f32 to vector<2x128xf32>
    %510 = arith.mulf %509, %508 : vector<2x128xf32>
    %cst_137 = arith.constant 5.000000e-01 : f32
    %511 = vector.broadcast %cst_137 : f32 to vector<2x128xf32>
    %512 = arith.addf %510, %511 : vector<2x128xf32>
    %513 = vector.extract_strided_slice %504 {offsets = [0, 128], sizes = [2, 128], strides = [1, 1]} : vector<2x512xf32> to vector<2x128xf32>
    %cst_138 = arith.constant 5.000000e-01 : f32
    %514 = vector.broadcast %cst_138 : f32 to vector<2x128xf32>
    %515 = arith.mulf %514, %513 : vector<2x128xf32>
    %516 = math.tanh %515 : vector<2x128xf32>
    %cst_139 = arith.constant 5.000000e-01 : f32
    %517 = vector.broadcast %cst_139 : f32 to vector<2x128xf32>
    %518 = arith.mulf %517, %516 : vector<2x128xf32>
    %cst_140 = arith.constant 5.000000e-01 : f32
    %519 = vector.broadcast %cst_140 : f32 to vector<2x128xf32>
    %520 = arith.addf %518, %519 : vector<2x128xf32>
    %521 = vector.extract_strided_slice %504 {offsets = [0, 256], sizes = [2, 128], strides = [1, 1]} : vector<2x512xf32> to vector<2x128xf32>
    %522 = vector.extract_strided_slice %504 {offsets = [0, 384], sizes = [2, 128], strides = [1, 1]} : vector<2x512xf32> to vector<2x128xf32>
    %523 = arith.mulf %512, %522 : vector<2x128xf32>
    %524 = arith.addf %521, %523 : vector<2x128xf32>
    %525 = math.tanh %524 : vector<2x128xf32>
    %cst_141 = arith.constant 1.000000e+00 : f32
    %526 = vector.broadcast %cst_141 : f32 to vector<2x128xf32>
    %527 = arith.subf %526, %520 : vector<2x128xf32>
    %528 = arith.mulf %527, %525 : vector<2x128xf32>
    %529 = arith.mulf %520, %468 : vector<2x128xf32>
    %530 = arith.addf %528, %529 : vector<2x128xf32>
    %531 = vector.broadcast %12 : vector<1x128xf32> to vector<2x128xf32>
    %532 = arith.mulf %530, %531 : vector<2x128xf32>
    %cst_142 = arith.constant dense<0.000000e+00> : vector<2xf32>
    %533 = vector.multi_reduction <add>, %532, %cst_142 [1] : vector<2x128xf32> to vector<2xf32>
    %534 = vector.shape_cast %533 : vector<2xf32> to vector<2x1xf32>
    %535 = vector.broadcast %13 : vector<1x1xf32> to vector<2x1xf32>
    %536 = arith.addf %534, %535 : vector<2x1xf32>
    %c0_143 = arith.constant 0 : index
    %c0_144 = arith.constant 0 : index
    %537 = vector.load %arg2[%c0_143, %c0_144] : memref<2x1xf32, #tpu.memory_space<vmem>>, vector<2x1xf32>
    tpu.vector_store %arg2[%c0_143, %c0_144], %536 {strides = array<i32>} : memref<2x1xf32, #tpu.memory_space<vmem>>, vector<2x1xf32>,
    return
  }
}

</mosaic_0001>

<bundles_post_ra>
// kernel: tpu_custom_call.1
= control target key start
LH: loop header
LB: loop body
LE: loop exit
PB: predicated region body
PF: predicated region fallthrough
CT: control target
= control target key end

     0   :  { %7 = vsyncpa [#allocation5], 0  ;;  %s4418_s0 = inlined_call_operand.hbm [shape: f32[64,896], index: 0, kind: input, shape index: {}]   ;;  %s4419_s1 = inlined_call_operand.hbm [shape: f32[24,512], index: 1, kind: input, shape index: {}]   ;;  %s4420_s2 = inlined_call_operand.vmem [shape: f32[2,1], index: 2, kind: output, shape index: {}]  }
   0x1   :  { %8 = vsyncpa [#allocation7], 0  ;;  %s3894_s9 = smov [#allocation4]   ;;  %s3846_s13 = scalar_lea.hbm %s4418_s0, 7168 }
   0x2   :  { %s14_s10 = sshll.u32 %s3894_s9, 4  ;;  %p3847_p0 = scmp.ne.s32.totalorder %s4418_s0, %s3846_s13  ;;  %s15_s10 = int_to_ptr.vmem [resolvable:$true] %s14_s10 }
   0x3   :  { %p3850_p1 = scmp.lt.u32.totalorder %s3846_s13, %s4418_s0 }
   0x5   :  { %p3852_p2 = pnand %p3850_p1, %p3847_p0 }
   0x7   :  { %3855 = shalt.err (!%p3852_p2)
}
   0x8   :  { %s3856_s18 = scalar_lea.vmem %s15_s10, 7168  ;;  %p3861_p4 = scmp.lt.s32.totalorder %s15_s10, %s15_s10 }
   0x9   :  { %p3857_p3 = scmp.ne.s32.totalorder %s15_s10, %s3856_s18  ;;  %p3862_p5 = scmp.lt.s32.totalorder %s3856_s18, %s3856_s18 }
   0xb   :  { %p3863_p6 = por %p3862_p5, %p3861_p4 }
   0xd   :  { %p3864_p7 = pnand %p3863_p6, %p3857_p3 }
   0xf   :  { %3867 = shalt.err (!%p3864_p7)
}
  0x10   :  { %s3895_s19 = smov 896   ;;  %s3896_s20 = smov 56  }
  0x11   :  { %20 = dma.hbm_to_vmem [thread:$0]  %s4418_s0, 7168, %s15_s10, [#allocation5], %s3895_s19, %s3895_s19, %s3896_s20  }
  0x12   :  { %s3897_s23 = smov [#allocation6]   ;;  %s3868_s27 = scalar_lea.hbm %s4419_s1, 1536 }
  0x13   :  { %s26_s24 = sshll.u32 %s3897_s23, 4  ;;  %p3869_p8 = scmp.ne.s32.totalorder %s4419_s1, %s3868_s27  ;;  %s27_s24 = int_to_ptr.vmem [resolvable:$true] %s26_s24 }
  0x14   :  { %p3872_p9 = scmp.lt.u32.totalorder %s3868_s27, %s4419_s1 }
  0x16   :  { %p3874_p10 = pnand %p3872_p9, %p3869_p8 }
  0x18   :  { %3877 = shalt.err (!%p3874_p10)
}
  0x19   :  { %s3878_s4 = scalar_lea.vmem %s27_s24, 1536  ;;  %p3883_p12 = scmp.lt.s32.totalorder %s27_s24, %s27_s24 }
  0x1a   :  { %p3879_p11 = scmp.ne.s32.totalorder %s27_s24, %s3878_s4  ;;  %p3884_p13 = scmp.lt.s32.totalorder %s3878_s4, %s3878_s4 }
  0x1c   :  { %p3885_p0 = por %p3884_p13, %p3883_p12 }
  0x1e   :  { %p3886_p1 = pnand %p3885_p0, %p3879_p11 }
  0x20   :  { %3889 = shalt.err (!%p3886_p1)
}
  0x21   :  { %s3898_s0 = smov 512   ;;  %s3899_s5 = smov 32  }
  0x22   :  { %32 = dma.hbm_to_vmem [thread:$0]  %s4419_s1, 1536, %s27_s24, [#allocation7], %s3898_s0, %s3898_s0, %s3899_s5  }
  0x23   :  { %3890 = dma.done.wait [#allocation5], 7168  }
  0x24   :  { %3891 = vsyncadd [#allocation5], 4294960128 }
  0x25   :  { %3892 = dma.done.wait [#allocation7], 1536  }
  0x26   :  { %3893 = vsyncadd [#allocation7], 4294965760  ;;  %v3900_v0 = vmov 0   ;;  %v323_v1 = vld [vmem:[#allocation6 + $0x20] sm:$0xff]  ;;  %v40_v3 = vld [vmem:[#allocation4 + $0x8] sm:$0xff]  ;;  %v3901_v10 = vmov 0.0   ;;  %v325_v56 = vlaneseq }
  0x27   :  { %3748 = vset.pattern.permute.xlu0 %v3900_v0  ;;  %v324_v2 = vld [vmem:[#allocation6 + $0x40] sm:$0xff]  ;;  %v42_v5 = vld [vmem:[#allocation4 + $0x18] sm:$0xff]  ;;  %v49_v7 = vld [vmem:[#allocation4 + $0x50] sm:$0xff]  ;;  %483 = vmatprep.mubr.f32.mxu0 %v3901_v10  ;;  %v3902_v55 = vmov 0.0|0.0   ;;  %vm3903_vm0 = vmmov 0   ;;  %vm3033_vm1 = vcmask 1041408  }
  0x28   :  { %371 = vperm.xlu0 %3748, %v323_v1   ;;  %v47_v4 = vld [vmem:[#allocation4 + $0x40] sm:$0xff]  ;;  %v46_v9 = vld [vmem:[#allocation4 + $0x38] sm:$0xff]  ;;  %554 = vmatprep.mubr.f32.mxu1 %v3901_v10  ;;  %v3947_v11 = vpack.c.bf16 %v49_v7, %v42_v5  ;;  %v41_v13 = vld [vmem:[#allocation4 + $0x10] sm:$0xff]  ;;  %v3997_v57 = vshrl.u32 %v325_v56, 7  ;;  %vm3042_vm2 = vcmask 1024  }
  0x29   :  { %v3943_v6 = vpack.c.bf16 %v47_v4, %v40_v3  ;;  %v39_v8 = vld [vmem:[#allocation4] sm:$0xff]  ;;  %v48_v14 = vld [vmem:[#allocation4 + $0x48] sm:$0xff]  ;;  %v54_v15 = vld [vmem:[#allocation4 + $0x78] sm:$0xff] }
  0x2a   :  { %v3949_v12 = vpack.c.bf16 %v46_v9, %v39_v8  ;;  %v3952_v16 = vpack.c.bf16 %v48_v14, %v41_v13  ;;  %v61_v17 = vld [vmem:[#allocation4 + $0xb0] sm:$0xff]  ;;  %v56_v18 = vld [vmem:[#allocation4 + $0x88] sm:$0xff]  ;;  %v63_v19 = vld [vmem:[#allocation4 + $0xc0] sm:$0xff]  ;;  %3291 = vmatprep.subr.bf16.mxu1 %v3947_v11  ;;  %v347_v58 = vsub.s32 0, %v3997_v57  ;;  %v359_v62 = vsub.s32 1, %v3997_v57 }
  0x2b   :  { %3275 = vmatprep.subr.bf16.mxu0 %v3943_v6  ;;  %v3956_v20 = vpack.c.bf16 %v61_v17, %v54_v15  ;;  %v3958_v21 = vpack.c.bf16 %v63_v19, %v56_v18  ;;  %v53_v22 = vld [vmem:[#allocation4 + $0x70] sm:$0xff]  ;;  %v60_v23 = vld [vmem:[#allocation4 + $0xa8] sm:$0xff]  ;;  %v55_v24 = vld [vmem:[#allocation4 + $0x80] sm:$0xff] }
  0x2c   :  { %376 = vperm.xlu0 %3748, %v324_v2   ;;  %3277 = vmatpush1.bf16.msra.mxu0 %v3949_v12  ;;  %v3961_v25 = vpack.c.bf16 %v60_v23, %v53_v22  ;;  %v62_v26 = vld [vmem:[#allocation4 + $0xb8] sm:$0xff]  ;;  %v68_v27 = vld [vmem:[#allocation4 + $0xe8] sm:$0xff]  ;;  %v75_v28 = vld [vmem:[#allocation4 + $0x120] sm:$0xff] }
  0x2d   :  { %3293 = vmatpush1.bf16.msra.mxu1 %v3952_v16  ;;  %3279 = vmatprep.subr.bf16.mxu0 %v3956_v20  ;;  %v3965_v29 = vpack.c.bf16 %v62_v26, %v55_v24  ;;  %v3967_v30 = vpack.c.bf16 %v75_v28, %v68_v27  ;;  %v70_v31 = vld [vmem:[#allocation4 + $0xf8] sm:$0xff]  ;;  %v77_v32 = vld [vmem:[#allocation4 + $0x130] sm:$0xff]  ;;  %v67_v33 = vld [vmem:[#allocation4 + $0xe0] sm:$0xff] }
  0x2e   :  { %3295 = vmatprep.subr.bf16.mxu1 %v3958_v21  ;;  %v3969_v34 = vpack.c.bf16 %v77_v32, %v70_v31  ;;  %v74_v35 = vld [vmem:[#allocation4 + $0x118] sm:$0xff]  ;;  %v69_v36 = vld [vmem:[#allocation4 + $0xf0] sm:$0xff]  ;;  %v76_v37 = vld [vmem:[#allocation4 + $0x128] sm:$0xff] }
  0x2f   :  { %v3972_v38 = vpack.c.bf16 %v74_v35, %v67_v33  ;;  %v82_v39 = vld [vmem:[#allocation4 + $0x158] sm:$0xff]  ;;  %v89_v40 = vld [vmem:[#allocation4 + $0x190] sm:$0xff]  ;;  %v84_v41 = vld [vmem:[#allocation4 + $0x168] sm:$0xff]  ;;  %v3976_v42 = vpack.c.bf16 %v76_v37, %v69_v36  ;;  %v327_v33 = vsub.s32 2, %v3997_v57 }
  0x30   :  { %3281 = vmatpush1.bf16.msra.mxu0 %v3961_v25  ;;  %v3978_v43 = vpack.c.bf16 %v89_v40, %v82_v39  ;;  %v91_v44 = vld [vmem:[#allocation4 + $0x1a0] sm:$0xff]  ;;  %v81_v45 = vld [vmem:[#allocation4 + $0x150] sm:$0xff]  ;;  %v88_v46 = vld [vmem:[#allocation4 + $0x188] sm:$0xff] }
  0x31   :  { %3297 = vmatpush1.bf16.msra.mxu1 %v3965_v29  ;;  %3283 = vmatprep.subr.bf16.mxu0 %v3967_v30  ;;  %v3981_v47 = vpack.c.bf16 %v91_v44, %v84_v41  ;;  %v83_v48 = vld [vmem:[#allocation4 + $0x160] sm:$0xff]  ;;  %v90_v49 = vld [vmem:[#allocation4 + $0x198] sm:$0xff]  ;;  %v44_v50 = vld [vmem:[#allocation4 + $0x28] sm:$0xff]  ;;  %v3984_v52 = vpack.c.bf16 %v88_v46, %v81_v45 }
  0x32   :  { %3299 = vmatprep.subr.bf16.mxu1 %v3969_v34  ;;  %v51_v51 = vld [vmem:[#allocation4 + $0x60] sm:$0xff]  ;;  %v3988_v53 = vpack.c.bf16 %v90_v49, %v83_v48  ;;  %v4002_v60 = vld [vmem:[#allocation6 + $0x8] sm:$0xff]  ;;  %v4004_v61 = vld [vmem:[#allocation6 + $0x10] sm:$0xff] }
  0x33   :  { %v3990_v54 = vpack.c.bf16 %v51_v51, %v44_v50  ;;  %v4000_v59 = vld [vmem:[#allocation6] sm:$0xff]  ;;  %v352_v0 = vrot.slane %v4002_v60, %v347_v58  ;;  %v356_v1 = vrot.slane %v4004_v61, %v347_v58  ;;  %v364_v3 = vrot.slane %v4002_v60, %v359_v62  ;;  %v50_v51 = vld [vmem:[#allocation4 + $0x58] sm:$0xff]  ;;  %v45_v56 = vld [vmem:[#allocation4 + $0x30] sm:$0xff] }
  0x34   :  { %3285 = vmatpush1.bf16.msra.mxu0 %v3972_v38  ;;  %v348_v63 = vrot.slane %v4000_v59, %v347_v58  ;;  %v360_v2 = vrot.slane %v4000_v59, %v359_v62  ;;  %v368_v4 = vrot.slane %v4004_v61, %v359_v62  ;;  %v4015_v36 = vrot.slane %v4000_v59, %v327_v33  ;;  %v43_v49 = vld [vmem:[#allocation4 + $0x20] sm:$0xff]  ;;  %v52_v58 = vld [vmem:[#allocation4 + $0x68] sm:$0xff] }
  0x35   :  { %3301 = vmatpush1.bf16.msra.mxu1 %v3976_v42  ;;  %3287 = vmatprep.subr.bf16.mxu0 %v3978_v43 }
  0x36   :  { %3303 = vmatprep.subr.bf16.mxu1 %v3981_v47 }
  0x38   :  { %3289 = vmatpush1.bf16.msra.mxu0 %v3984_v52 }
  0x39   :  { %3305 = vmatpush1.bf16.msra.mxu1 %v3988_v53  ;;  %3307 = vmatprep.subr.bf16.mxu0 %v3990_v54 }
  0x3a   :  { %3322 = vmatprep.subr.bf16.mxu1 %v3902_v55 }
  0xa7   :  { %v372_v5 = vpop.permute.xlu0 %371 }
  0xa8   :  { %v379_v7 = vmul.f32 %v372_v5, %v348_v63  ;;  %v380_v8 = vmul.f32 %v372_v5, %v352_v0  ;;  %v381_v9 = vmul.f32 %v372_v5, %v356_v1  ;;  %v57_v5 = vld [vmem:[#allocation4 + $0x90] sm:$0xff] }
  0xaa   :  { %v385_v13 = vadd.f32 %v379_v7, %v360_v2  ;;  %v386_v14 = vadd.f32 %v380_v8, %v364_v3  ;;  %v387_v15 = vadd.f32 %v381_v9, %v368_v4  ;;  %v64_v9 = vld [vmem:[#allocation4 + $0xc8] sm:$0xff] }
  0xab   :  { %v377_v17 = vpop.permute.xlu0 %376 }
  0xac   :  { %391 = vst [vmem:[#allocation3] sm:$0xff] %v385_v13  ;;  %392 = vst [vmem:[#allocation3 + $0x8] sm:$0xff] %v386_v14  ;;  %v382_v18 = vmul.f32 %v377_v17, %v348_v63  ;;  %v383_v19 = vmul.f32 %v377_v17, %v352_v0  ;;  %v384_v22 = vmul.f32 %v377_v17, %v356_v1  ;;  %v58_v63 = vld [vmem:[#allocation4 + $0x98] sm:$0xff]  ;;  %v65_v0 = vld [vmem:[#allocation4 + $0xd0] sm:$0xff] }
  0xad   :  { %393 = vst [vmem:[#allocation3 + $0x10] sm:$0xff] %v387_v15  ;;  %v4024_v8 = vpack.c.bf16 %v65_v0, %v58_v63  ;;  %v59_v13 = vld [vmem:[#allocation4 + $0xa0] sm:$0xff]  ;;  %v66_v14 = vld [vmem:[#allocation4 + $0xd8] sm:$0xff]  ;;  %v72_v15 = vld [vmem:[#allocation4 + $0x108] sm:$0xff] }
  0xae   :  { %v388_v23 = vadd.f32 %v382_v18, %v360_v2  ;;  %v389_v24 = vadd.f32 %v383_v19, %v364_v3  ;;  %v390_v26 = vadd.f32 %v384_v22, %v368_v4  ;;  %v4018_v3 = vpack.c.bf16 %v50_v51, %v43_v49  ;;  %v79_v17 = vld [vmem:[#allocation4 + $0x140] sm:$0xff] }
  0xaf   :  { %v4020_v4 = vpack.c.bf16 %v52_v58, %v45_v56  ;;  %v4030_v18 = vpack.c.bf16 %v64_v9, %v57_v5  ;;  %v4032_v19 = vpack.c.bf16 %v66_v14, %v59_v13  ;;  %v71_v22 = vld [vmem:[#allocation4 + $0x100] sm:$0xff] }
  0xb0   :  { %394 = vst [vmem:[#allocation3 + $0x18] sm:$0xff] %v388_v23  ;;  %395 = vst [vmem:[#allocation3 + $0x20] sm:$0xff] %v389_v24  ;;  %v4036_v23 = vpack.c.bf16 %v79_v17, %v72_v15  ;;  %v78_v24 = vld [vmem:[#allocation4 + $0x138] sm:$0xff] }
  0xb1   :  { %396 = vst [vmem:[#allocation3 + $0x28] sm:$0xff] %v390_v26  ;;  %v73_v26 = vld [vmem:[#allocation4 + $0x110] sm:$0xff] }
  0xb3   :  { %v397_v27 = vld [vmem:[#allocation3] sm:$0x3]  ;;  %v398_v31 = vld [vmem:[#allocation3 + $0x8] sm:$0x3] }
  0xb4   :  { %v401_v28 = vmul.f32 0.5, %v397_v27  ;;  %v406_v32 = vmul.f32 0.5, %v398_v31  ;;  %v399_v41 = vld [vmem:[#allocation3 + $0x10] sm:$0x3]  ;;  %v80_v27 = vld [vmem:[#allocation4 + $0x148] sm:$0xff]  ;;  %v93_v31 = vld [vmem:[#allocation4 + $0x1b0] sm:$0xff] }
  0xb5   :  { %v4045_v33 = vpack.c.bf16 %v80_v27, %v73_v26 }
  0xb6   :  { %3749 = vtanh.f32 %v401_v28  ;;  %v86_v28 = vld [vmem:[#allocation4 + $0x178] sm:$0xff] }
  0xb7   :  { %3751 = vtanh.f32 %v406_v32  ;;  %v4043_v32 = vpack.c.bf16 %v78_v24, %v71_v22 }
  0xc0   :  { %v3750_v35 = vpop.eup %3749 }
  0xc1   :  { %v403_v37 = vmul.f32 0.5, %v3750_v35  ;;  %v3752_v44 = vpop.eup %3751  ;;  %v85_v35 = vld [vmem:[#allocation4 + $0x170] sm:$0xff] }
  0xc2   :  { %v408_v46 = vmul.f32 0.5, %v3752_v44 }
  0xc3   :  { %v404_v39 = vadd.f32 0.5, %v403_v37  ;;  %v4049_v37 = vpack.c.bf16 %v93_v31, %v86_v28 }
  0xc4   :  { %v409_v48 = vadd.f32 0.5, %v408_v46  ;;  %v331_v46 = vsub.s32 3, %v3997_v57 }
  0xc5   :  { %v411_v40 = vmul.f32 %v404_v39, %v4015_v36  ;;  %v92_v39 = vld [vmem:[#allocation4 + $0x1a8] sm:$0xff] }
  0xc6   :  { %v414_v50 = vsub.f32 1.0, %v409_v48  ;;  %v416_v2 = vmul.f32 0.0, %v409_v48  ;;  %v4053_v44 = vpack.c.bf16 %v92_v39, %v85_v35  ;;  %v4085_v48 = vrot.slane %v4000_v59, %v331_v46  ;;  %v322_v59 = vld [vmem:[#allocation6 + $0x18] sm:$0xff] }
  0xc7   :  { %v412_v45 = vadd.f32 %v411_v40, %v399_v41  ;;  %v87_v40 = vld [vmem:[#allocation4 + $0x180] sm:$0xff]  ;;  %v94_v41 = vld [vmem:[#allocation4 + $0x1b8] sm:$0xff]  ;;  %v4089_v15 = vrot.slane %v4002_v60, %v331_v46  ;;  %v4091_v17 = vrot.slane %v322_v59, %v331_v46  ;;  %v4095_v31 = vrot.slane %v4004_v61, %v331_v46 }
  0xc9   :  { %3753 = vtanh.f32 %v412_v45  ;;  %v4055_v45 = vpack.c.bf16 %v94_v41, %v87_v40 }
  0xd3   :  { %v3754_v62 = vpop.eup %3753 }
  0xd4   :  { %v415_v1 = vmul.f32 %v3754_v62, %v414_v50  ;;  %v721_v62 = vld [vmem:[#allocation3] sm:$0xc] }
  0xd6   :  { %v4022_v7 = vadd.f32 %v416_v2, %v415_v1  ;;  %v722_v2 = vld [vmem:[#allocation3 + $0x8] sm:$0xc] }
  0xd8   :  { %484 = vmatmul.mubr.f32.vlgmr.msra.gmra.mrb[0].mxu0 %v4022_v7  ;;  %555 = vmatmul.mubr.f32.vlgmr.msra.gmra.mrb[0].mxu1 %v4022_v7 }
  0xd9   :  { %3309 = vmatpush1.bf16.msra.mxu0 %v4018_v3  ;;  %3324 = vmatpush3.bf16.msra.mxu1 %v4020_v4 }
  0xda   :  { %3311 = vmatprep.subr.bf16.mxu0 %v4024_v8  ;;  %3325 = vmatprep.subr.bf16.mxu1 %v3902_v55 }
  0xdb   :  { %625 = vmatprep.mubr.f32.mxu0 %v3901_v10  ;;  %3138 = vmatprep.mubr.msk.f32.mxu1 %vm3903_vm0, %v3901_v10 }
  0xdd   :  { %3313 = vmatpush1.bf16.msra.mxu0 %v4030_v18  ;;  %3327 = vmatpush3.bf16.msra.mxu1 %v4032_v19 }
  0xde   :  { %3315 = vmatprep.subr.bf16.mxu0 %v4036_v23  ;;  %3328 = vmatprep.subr.bf16.mxu1 %v3902_v55 }
  0xe1   :  { %3317 = vmatpush1.bf16.msra.mxu0 %v4043_v32  ;;  %3330 = vmatpush3.bf16.msra.mxu1 %v4045_v33 }
  0xe2   :  { %3319 = vmatprep.subr.bf16.mxu0 %v4049_v37  ;;  %3331 = vmatprep.subr.bf16.mxu1 %v3902_v55 }
  0xe5   :  { %3321 = vmatpush1.bf16.msra.mxu0 %v4053_v44  ;;  %3333 = vmatpush3.bf16.msra.mxu1 %v4055_v45 }
  0xe6   :  { %3335 = vmatprep.subr.bf16.mxu0 %v3943_v6  ;;  %3351 = vmatprep.subr.bf16.mxu1 %v3947_v11 }
  0xe8   :  { %626 = vmatmul.mubr.f32.vlgmr.msra.gmra.mrb[2].mxu0 %v4022_v7  ;;  %3139 = vmatmul.mubr.f32.vlgmr.msra.gmra.mrb[2].mxu1 %v4022_v7 }
  0xe9   :  { %3337 = vmatpush1.bf16.msra.mxu0 %v3949_v12  ;;  %3353 = vmatpush1.bf16.msra.mxu1 %v3952_v16 }
  0xea   :  { %3339 = vmatprep.subr.bf16.mxu0 %v3956_v20  ;;  %3355 = vmatprep.subr.bf16.mxu1 %v3958_v21 }
  0xeb   :  { %825 = vmatprep.mubr.f32.mxu0 %v3901_v10  ;;  %896 = vmatprep.mubr.f32.mxu1 %v3901_v10 }
  0xed   :  { %3341 = vmatpush1.bf16.msra.mxu0 %v3961_v25  ;;  %3357 = vmatpush1.bf16.msra.mxu1 %v3965_v29 }
  0xee   :  { %3343 = vmatprep.subr.bf16.mxu0 %v3967_v30  ;;  %3359 = vmatprep.subr.bf16.mxu1 %v3969_v34 }
  0xf1   :  { %3345 = vmatpush1.bf16.msra.mxu0 %v3972_v38  ;;  %3361 = vmatpush1.bf16.msra.mxu1 %v3976_v42 }
  0xf2   :  { %3347 = vmatprep.subr.bf16.mxu0 %v3978_v43  ;;  %3363 = vmatprep.subr.bf16.mxu1 %v3981_v47 }
  0xf5   :  { %3349 = vmatpush1.bf16.msra.mxu0 %v3984_v52  ;;  %3365 = vmatpush1.bf16.msra.mxu1 %v3988_v53 }
  0xf6   :  { %3367 = vmatprep.subr.bf16.mxu0 %v3990_v54  ;;  %3382 = vmatprep.subr.bf16.mxu1 %v3902_v55 }
 0x1ab   :  { %v485_v49 = vpop.f32.mrb[0].mxu0  ;;  %v556_v50 = vpop.f32.mrb[0].mxu1 }
 0x1ac   :  { %v725_v51 = vrot.slane %v485_v49, 6  ;;  %v487_v56 = vpop.f32.mrb[1].mxu0  ;;  %v558_v58 = vpop.f32.mrb[1].mxu1  ;;  %v740_v24 = vadd.f32 %v556_v50, %v4015_v36 }
 0x1ad   :  { %v733_v63 = vrot.slane %v487_v56, 6  ;;  %v702_v0 = vadd.f32 %v558_v58, %v4085_v48 }
 0x1ae   :  { %v727_v1 = vadd.f32 %v725_v51, %v721_v62  ;;  %v742_v50 = vrot.slane %v740_v24, 6 }
 0x1af   :  { %v735_v5 = vadd.f32 %v733_v63, %v722_v2  ;;  %v706_v9 = vmul.f32 0.5, %v702_v0  ;;  %v750_v0 = vrot.slane %v4022_v7, 6 }
 0x1b0   :  { %v728_v13 = vmul.f32 0.5, %v727_v1 }
 0x1b1   :  { %v736_v14 = vmul.f32 0.5, %v735_v5  ;;  %3755 = vtanh.f32 %v706_v9  ;;  %v723_v5 = vld [vmem:[#allocation3 + $0x10] sm:$0xc] }
 0x1b2   :  { %3757 = vtanh.f32 %v728_v13 }
 0x1b3   :  { %3759 = vtanh.f32 %v736_v14 }
 0x1bb   :  { %v3756_v22 = vpop.eup %3755  ;;  %v627_v26 = vpop.f32.mrb[2].mxu0 }
 0x1bc   :  { %v698_v27 = vpop.f32.mrb[2].mxu1  ;;  %v3758_v28 = vpop.eup %3757  ;;  %v708_v35 = vmul.f32 0.5, %v3756_v22  ;;  %v703_v39 = vadd.f32 %v627_v26, %v4089_v15 }
 0x1bd   :  { %v629_v40 = vpop.f32.mrb[3].mxu0  ;;  %v3140_v41 = vpop.f32.mrb[3].mxu1  ;;  %v730_v51 = vmul.f32 0.5, %v3758_v28  ;;  %v705_v58 = vadd.f32 %v698_v27, %v4091_v17 }
 0x1be   :  { %v3760_v49 = vpop.eup %3759  ;;  %v710_v56 = vmul.f32 0.5, %v703_v39  ;;  %v709_v62 = vadd.f32 0.5, %v708_v35  ;;  %v704_v46 = vadd.f32 %v629_v40, %v4095_v31 }
 0x1bf   :  { %v738_v60 = vmul.f32 0.5, %v3760_v49  ;;  %v731_v63 = vadd.f32 0.5, %v730_v51 }
 0x1c0   :  { %3761 = vtanh.f32 %v710_v56  ;;  %v714_v61 = vmul.f32 %v709_v62, %v705_v58 }
 0x1c1   :  { %v739_v1 = vadd.f32 0.5, %v738_v60  ;;  %v744_v2 = vmul.f32 %v742_v50, %v731_v63 }
 0x1c2   :  { %v715_v13 = vadd.f32 %v714_v61, %v704_v46 }
 0x1c3   :  { %v752_v9 = vmul.f32 %v750_v0, %v739_v1  ;;  %v745_v14 = vadd.f32 %v744_v2, %v723_v5  ;;  %v747_v28 = vsub.f32 1.0, %v739_v1  ;;  %v1063_v1 = vld [vmem:[#allocation3] sm:$0x30]  ;;  %v1064_v5 = vld [vmem:[#allocation3 + $0x8] sm:$0x30] }
 0x1c4   :  { %3763 = vtanh.f32 %v715_v13 }
 0x1c5   :  { %3765 = vtanh.f32 %v745_v14 }
 0x1ca   :  { %v3762_v59 = vpop.eup %3761 }
 0x1cb   :  { %v712_v22 = vmul.f32 0.5, %v3762_v59 }
 0x1cd   :  { %v713_v26 = vadd.f32 0.5, %v712_v22 }
 0x1ce   :  { %v3764_v27 = vpop.eup %3763 }
 0x1cf   :  { %v3766_v24 = vpop.eup %3765  ;;  %v717_v35 = vsub.f32 1.0, %v713_v26  ;;  %v719_v39 = vmul.f32 0.0, %v713_v26 }
 0x1d0   :  { %v748_v7 = vmul.f32 %v3766_v24, %v747_v28 }
 0x1d1   :  { %v718_v41 = vmul.f32 %v3764_v27, %v717_v35 }
 0x1d2   :  { %v4101_v49 = vadd.f32 %v752_v9, %v748_v7 }
 0x1d3   :  { %v4103_v40 = vadd.f32 %v719_v39, %v718_v41 }
 0x1d5   :  { %v755_v51 = vrot.slane %v4103_v40, 6 }
 0x1d7   :  { %v757_v60 = vadd.f32 %v755_v51, %v4101_v49 }
 0x1d9   :  { %v759_v56 = vrot.slane %v757_v60, 2 }
 0x1db   :  { %826 = vmatmul.mubr.f32.vlgmr.msra.gmra.mrb[4].mxu0 %v759_v56  ;;  %897 = vmatmul.mubr.f32.vlgmr.msra.gmra.mrb[4].mxu1 %v759_v56 }
 0x1dc   :  { %3369 = vmatpush1.bf16.msra.mxu0 %v4018_v3  ;;  %3384 = vmatpush3.bf16.msra.mxu1 %v4020_v4 }
 0x1dd   :  { %3371 = vmatprep.subr.bf16.mxu0 %v4024_v8  ;;  %3385 = vmatprep.subr.bf16.mxu1 %v3902_v55 }
 0x1de   :  { %967 = vmatprep.mubr.f32.mxu0 %v3901_v10  ;;  %3157 = vmatprep.mubr.msk.f32.mxu1 %vm3903_vm0, %v3901_v10 }
 0x1e0   :  { %3373 = vmatpush1.bf16.msra.mxu0 %v4030_v18  ;;  %3387 = vmatpush3.bf16.msra.mxu1 %v4032_v19 }
 0x1e1   :  { %3375 = vmatprep.subr.bf16.mxu0 %v4036_v23  ;;  %3388 = vmatprep.subr.bf16.mxu1 %v3902_v55 }
 0x1e4   :  { %3377 = vmatpush1.bf16.msra.mxu0 %v4043_v32  ;;  %3390 = vmatpush3.bf16.msra.mxu1 %v4045_v33 }
 0x1e5   :  { %3379 = vmatprep.subr.bf16.mxu0 %v4049_v37  ;;  %3391 = vmatprep.subr.bf16.mxu1 %v3902_v55 }
 0x1e8   :  { %3381 = vmatpush1.bf16.msra.mxu0 %v4053_v44  ;;  %3393 = vmatpush3.bf16.msra.mxu1 %v4055_v45 }
 0x1e9   :  { %3395 = vmatprep.subr.bf16.mxu0 %v3943_v6  ;;  %3411 = vmatprep.subr.bf16.mxu1 %v3947_v11 }
 0x1eb   :  { %968 = vmatmul.mubr.f32.vlgmr.msra.gmra.mrb[6].mxu0 %v759_v56  ;;  %3158 = vmatmul.mubr.f32.vlgmr.msra.gmra.mrb[6].mxu1 %v759_v56 }
 0x1ec   :  { %3397 = vmatpush1.bf16.msra.mxu0 %v3949_v12  ;;  %3413 = vmatpush1.bf16.msra.mxu1 %v3952_v16 }
 0x1ed   :  { %3399 = vmatprep.subr.bf16.mxu0 %v3956_v20  ;;  %3415 = vmatprep.subr.bf16.mxu1 %v3958_v21 }
 0x1ee   :  { %1167 = vmatprep.mubr.f32.mxu0 %v3901_v10  ;;  %1238 = vmatprep.mubr.f32.mxu1 %v3901_v10 }
 0x1f0   :  { %3401 = vmatpush1.bf16.msra.mxu0 %v3961_v25  ;;  %3417 = vmatpush1.bf16.msra.mxu1 %v3965_v29 }
 0x1f1   :  { %3403 = vmatprep.subr.bf16.mxu0 %v3967_v30  ;;  %3419 = vmatprep.subr.bf16.mxu1 %v3969_v34 }
 0x1f4   :  { %3405 = vmatpush1.bf16.msra.mxu0 %v3972_v38  ;;  %3421 = vmatpush1.bf16.msra.mxu1 %v3976_v42 }
 0x1f5   :  { %3407 = vmatprep.subr.bf16.mxu0 %v3978_v43  ;;  %3423 = vmatprep.subr.bf16.mxu1 %v3981_v47 }
 0x1f8   :  { %3409 = vmatpush1.bf16.msra.mxu0 %v3984_v52  ;;  %3425 = vmatpush1.bf16.msra.mxu1 %v3988_v53 }
 0x1f9   :  { %3427 = vmatprep.subr.bf16.mxu0 %v3990_v54  ;;  %3442 = vmatprep.subr.bf16.mxu1 %v3902_v55 }
 0x2ae   :  { %v827_v58 = vpop.f32.mrb[4].mxu0  ;;  %v898_v62 = vpop.f32.mrb[4].mxu1 }
 0x2af   :  { %v1067_v63 = vrot.slane %v827_v58, 4  ;;  %v829_v50 = vpop.f32.mrb[5].mxu0  ;;  %v900_v0 = vpop.f32.mrb[5].mxu1  ;;  %v1082_v26 = vadd.f32 %v898_v62, %v4015_v36 }
 0x2b0   :  { %v1075_v61 = vrot.slane %v829_v50, 4  ;;  %v1044_v46 = vadd.f32 %v900_v0, %v4085_v48 }
 0x2b1   :  { %v1069_v2 = vadd.f32 %v1067_v63, %v1063_v1  ;;  %v1084_v1 = vrot.slane %v1082_v26, 4 }
 0x2b2   :  { %v1077_v9 = vadd.f32 %v1075_v61, %v1064_v5  ;;  %v1048_v13 = vmul.f32 0.5, %v1044_v46  ;;  %v1092_v61 = vrot.slane %v4101_v49, 6 }
 0x2b3   :  { %v1070_v14 = vmul.f32 0.5, %v1069_v2 }
 0x2b4   :  { %v1078_v59 = vmul.f32 0.5, %v1077_v9  ;;  %3767 = vtanh.f32 %v1048_v13  ;;  %v1065_v9 = vld [vmem:[#allocation3 + $0x10] sm:$0x30] }
 0x2b5   :  { %3769 = vtanh.f32 %v1070_v14 }
 0x2b6   :  { %3771 = vtanh.f32 %v1078_v59 }
 0x2be   :  { %v3768_v22 = vpop.eup %3767  ;;  %v969_v27 = vpop.f32.mrb[6].mxu0 }
 0x2bf   :  { %v1040_v28 = vpop.f32.mrb[6].mxu1  ;;  %v3770_v24 = vpop.eup %3769  ;;  %v1050_v35 = vmul.f32 0.5, %v3768_v22  ;;  %v1045_v7 = vadd.f32 %v969_v27, %v4089_v15 }
 0x2c0   :  { %v971_v39 = vpop.f32.mrb[7].mxu0  ;;  %v3159_v41 = vpop.f32.mrb[7].mxu1  ;;  %v1072_v60 = vmul.f32 0.5, %v3770_v24  ;;  %v1047_v63 = vadd.f32 %v1040_v28, %v4091_v17 }
 0x2c1   :  { %v3772_v51 = vpop.eup %3771  ;;  %v1052_v58 = vmul.f32 0.5, %v1045_v7  ;;  %v1051_v50 = vadd.f32 0.5, %v1050_v35  ;;  %v1046_v2 = vadd.f32 %v971_v39, %v4095_v31 }
 0x2c2   :  { %v1080_v56 = vmul.f32 0.5, %v3772_v51  ;;  %v1073_v0 = vadd.f32 0.5, %v1072_v60 }
 0x2c3   :  { %3773 = vtanh.f32 %v1052_v58  ;;  %v1056_v46 = vmul.f32 %v1051_v50, %v1047_v63 }
 0x2c4   :  { %v1081_v62 = vadd.f32 0.5, %v1080_v56  ;;  %v1086_v5 = vmul.f32 %v1084_v1, %v1073_v0 }
 0x2c5   :  { %v1057_v14 = vadd.f32 %v1056_v46, %v1046_v2 }
 0x2c6   :  { %v1094_v13 = vmul.f32 %v1092_v61, %v1081_v62  ;;  %v1087_v59 = vadd.f32 %v1086_v5, %v1065_v9  ;;  %v1089_v35 = vsub.f32 1.0, %v1081_v62  ;;  %v1405_v62 = vld [vmem:[#allocation3] sm:$0xc0]  ;;  %v1406_v9 = vld [vmem:[#allocation3 + $0x8] sm:$0xc0] }
 0x2c7   :  { %3775 = vtanh.f32 %v1057_v14 }
 0x2c8   :  { %3777 = vtanh.f32 %v1087_v59 }
 0x2cd   :  { %v3774_v22 = vpop.eup %3773 }
 0x2ce   :  { %v1054_v27 = vmul.f32 0.5, %v3774_v22 }
 0x2d0   :  { %v1055_v28 = vadd.f32 0.5, %v1054_v27 }
 0x2d1   :  { %v3776_v24 = vpop.eup %3775 }
 0x2d2   :  { %v3778_v26 = vpop.eup %3777  ;;  %v1059_v7 = vsub.f32 1.0, %v1055_v28  ;;  %v1061_v41 = vmul.f32 %v1055_v28, %v4103_v40 }
 0x2d3   :  { %v1090_v49 = vmul.f32 %v3778_v26, %v1089_v35 }
 0x2d4   :  { %v1060_v51 = vmul.f32 %v3776_v24, %v1059_v7 }
 0x2d5   :  { %v4151_v60 = vadd.f32 %v1094_v13, %v1090_v49 }
 0x2d6   :  { %v4153_v39 = vadd.f32 %v1061_v41, %v1060_v51 }
 0x2d8   :  { %v1097_v56 = vrot.slane %v4153_v39, 4 }
 0x2da   :  { %v1099_v58 = vadd.f32 %v1097_v56, %v4151_v60 }
 0x2dc   :  { %v1101_v63 = vrot.slane %v1099_v58, 4 }
 0x2de   :  { %1168 = vmatmul.mubr.f32.vlgmr.msra.gmra.mrb[8].mxu0 %v1101_v63  ;;  %1239 = vmatmul.mubr.f32.vlgmr.msra.gmra.mrb[8].mxu1 %v1101_v63 }
 0x2df   :  { %3429 = vmatpush1.bf16.msra.mxu0 %v4018_v3  ;;  %3444 = vmatpush3.bf16.msra.mxu1 %v4020_v4 }
 0x2e0   :  { %3431 = vmatprep.subr.bf16.mxu0 %v4024_v8  ;;  %3445 = vmatprep.subr.bf16.mxu1 %v3902_v55 }
 0x2e1   :  { %1309 = vmatprep.mubr.f32.mxu0 %v3901_v10  ;;  %3176 = vmatprep.mubr.msk.f32.mxu1 %vm3903_vm0, %v3901_v10 }
 0x2e3   :  { %3433 = vmatpush1.bf16.msra.mxu0 %v4030_v18  ;;  %3447 = vmatpush3.bf16.msra.mxu1 %v4032_v19 }
 0x2e4   :  { %3435 = vmatprep.subr.bf16.mxu0 %v4036_v23  ;;  %3448 = vmatprep.subr.bf16.mxu1 %v3902_v55 }
 0x2e7   :  { %3437 = vmatpush1.bf16.msra.mxu0 %v4043_v32  ;;  %3450 = vmatpush3.bf16.msra.mxu1 %v4045_v33 }
 0x2e8   :  { %3439 = vmatprep.subr.bf16.mxu0 %v4049_v37  ;;  %3451 = vmatprep.subr.bf16.mxu1 %v3902_v55 }
 0x2eb   :  { %3441 = vmatpush1.bf16.msra.mxu0 %v4053_v44  ;;  %3453 = vmatpush3.bf16.msra.mxu1 %v4055_v45 }
 0x2ec   :  { %3455 = vmatprep.subr.bf16.mxu0 %v3943_v6  ;;  %3471 = vmatprep.subr.bf16.mxu1 %v3947_v11 }
 0x2ee   :  { %1310 = vmatmul.mubr.f32.vlgmr.msra.gmra.mrb[10].mxu0 %v1101_v63  ;;  %3177 = vmatmul.mubr.f32.vlgmr.msra.gmra.mrb[10].mxu1 %v1101_v63 }
 0x2ef   :  { %3457 = vmatpush1.bf16.msra.mxu0 %v3949_v12  ;;  %3473 = vmatpush1.bf16.msra.mxu1 %v3952_v16 }
 0x2f0   :  { %3459 = vmatprep.subr.bf16.mxu0 %v3956_v20  ;;  %3475 = vmatprep.subr.bf16.mxu1 %v3958_v21 }
 0x2f1   :  { %1509 = vmatprep.mubr.f32.mxu0 %v3901_v10  ;;  %1580 = vmatprep.mubr.f32.mxu1 %v3901_v10 }
 0x2f3   :  { %3461 = vmatpush1.bf16.msra.mxu0 %v3961_v25  ;;  %3477 = vmatpush1.bf16.msra.mxu1 %v3965_v29 }
 0x2f4   :  { %3463 = vmatprep.subr.bf16.mxu0 %v3967_v30  ;;  %3479 = vmatprep.subr.bf16.mxu1 %v3969_v34 }
 0x2f7   :  { %3465 = vmatpush1.bf16.msra.mxu0 %v3972_v38  ;;  %3481 = vmatpush1.bf16.msra.mxu1 %v3976_v42 }
 0x2f8   :  { %3467 = vmatprep.subr.bf16.mxu0 %v3978_v43  ;;  %3483 = vmatprep.subr.bf16.mxu1 %v3981_v47 }
 0x2fb   :  { %3469 = vmatpush1.bf16.msra.mxu0 %v3984_v52  ;;  %3485 = vmatpush1.bf16.msra.mxu1 %v3988_v53 }
 0x2fc   :  { %3487 = vmatprep.subr.bf16.mxu0 %v3990_v54  ;;  %3502 = vmatprep.subr.bf16.mxu1 %v3902_v55 }
 0x3b1   :  { %v1169_v40 = vpop.f32.mrb[8].mxu0  ;;  %v1240_v50 = vpop.f32.mrb[8].mxu1 }
 0x3b2   :  { %v1409_v0 = vrot.slane %v1169_v40, 2  ;;  %v1171_v1 = vpop.f32.mrb[9].mxu0  ;;  %v1242_v61 = vpop.f32.mrb[9].mxu1  ;;  %v1424_v28 = vadd.f32 %v1240_v50, %v4015_v36 }
 0x3b3   :  { %v1417_v46 = vrot.slane %v1171_v1, 2  ;;  %v1386_v2 = vadd.f32 %v1242_v61, %v4085_v48 }
 0x3b4   :  { %v1411_v5 = vadd.f32 %v1409_v0, %v1405_v62  ;;  %v1426_v62 = vrot.slane %v1424_v28, 2 }
 0x3b5   :  { %v1419_v13 = vadd.f32 %v1417_v46, %v1406_v9  ;;  %v1390_v14 = vmul.f32 0.5, %v1386_v2  ;;  %v1434_v46 = vrot.slane %v4151_v60, 6 }
 0x3b6   :  { %v1412_v59 = vmul.f32 0.5, %v1411_v5 }
 0x3b7   :  { %v1420_v22 = vmul.f32 0.5, %v1419_v13  ;;  %3779 = vtanh.f32 %v1390_v14  ;;  %v1407_v13 = vld [vmem:[#allocation3 + $0x10] sm:$0xc0] }
 0x3b8   :  { %3781 = vtanh.f32 %v1412_v59 }
 0x3b9   :  { %3783 = vtanh.f32 %v1420_v22 }
 0x3c1   :  { %v3780_v27 = vpop.eup %3779  ;;  %v1311_v24 = vpop.f32.mrb[10].mxu0 }
 0x3c2   :  { %v1382_v35 = vpop.f32.mrb[10].mxu1  ;;  %v3782_v26 = vpop.eup %3781  ;;  %v1392_v7 = vmul.f32 0.5, %v3780_v27  ;;  %v1387_v49 = vadd.f32 %v1311_v24, %v4089_v15 }
 0x3c3   :  { %v1313_v41 = vpop.f32.mrb[11].mxu0  ;;  %v3178_v51 = vpop.f32.mrb[11].mxu1  ;;  %v1414_v58 = vmul.f32 0.5, %v3782_v26  ;;  %v1389_v0 = vadd.f32 %v1382_v35, %v4091_v17 }
 0x3c4   :  { %v3784_v56 = vpop.eup %3783  ;;  %v1394_v40 = vmul.f32 0.5, %v1387_v49  ;;  %v1393_v1 = vadd.f32 0.5, %v1392_v7  ;;  %v1388_v5 = vadd.f32 %v1313_v41, %v4095_v31 }
 0x3c5   :  { %v1422_v63 = vmul.f32 0.5, %v3784_v56  ;;  %v1415_v61 = vadd.f32 0.5, %v1414_v58 }
 0x3c6   :  { %3785 = vtanh.f32 %v1394_v40  ;;  %v1398_v2 = vmul.f32 %v1393_v1, %v1389_v0  ;;  %v1747_v1 = vld [vmem:[#allocation3 + $0x18] sm:$0x3] }
 0x3c7   :  { %v1423_v50 = vadd.f32 0.5, %v1422_v63  ;;  %v1428_v9 = vmul.f32 %v1426_v62, %v1415_v61 }
 0x3c8   :  { %v1399_v59 = vadd.f32 %v1398_v2, %v1388_v5 }
 0x3c9   :  { %v1436_v14 = vmul.f32 %v1434_v46, %v1423_v50  ;;  %v1429_v22 = vadd.f32 %v1428_v9, %v1407_v13  ;;  %v1431_v7 = vsub.f32 1.0, %v1423_v50  ;;  %v1748_v50 = vld [vmem:[#allocation3 + $0x20] sm:$0x3] }
 0x3ca   :  { %3787 = vtanh.f32 %v1399_v59 }
 0x3cb   :  { %3789 = vtanh.f32 %v1429_v22 }
 0x3d0   :  { %v3786_v27 = vpop.eup %3785 }
 0x3d1   :  { %v1396_v24 = vmul.f32 0.5, %v3786_v27 }
 0x3d3   :  { %v1397_v35 = vadd.f32 0.5, %v1396_v24 }
 0x3d4   :  { %v3788_v26 = vpop.eup %3787 }
 0x3d5   :  { %v3790_v28 = vpop.eup %3789  ;;  %v1401_v49 = vsub.f32 1.0, %v1397_v35  ;;  %v1403_v51 = vmul.f32 %v1397_v35, %v4153_v39 }
 0x3d6   :  { %v1432_v60 = vmul.f32 %v3790_v28, %v1431_v7 }
 0x3d7   :  { %v1402_v56 = vmul.f32 %v3788_v26, %v1401_v49 }
 0x3d8   :  { %v4201_v58 = vadd.f32 %v1436_v14, %v1432_v60 }
 0x3d9   :  { %v4203_v41 = vadd.f32 %v1403_v51, %v1402_v56 }
 0x3db   :  { %v1439_v63 = vrot.slane %v4203_v41, 2 }
 0x3dd   :  { %v1441_v40 = vadd.f32 %v1439_v63, %v4201_v58 }
 0x3df   :  { %v1443_v0 = vrot.slane %v1441_v40, 6 }
 0x3e1   :  { %1510 = vmatmul.mubr.f32.vlgmr.msra.gmra.mrb[12].mxu0 %v1443_v0  ;;  %1581 = vmatmul.mubr.f32.vlgmr.msra.gmra.mrb[12].mxu1 %v1443_v0 }
 0x3e2   :  { %3489 = vmatpush1.bf16.msra.mxu0 %v4018_v3  ;;  %3504 = vmatpush3.bf16.msra.mxu1 %v4020_v4 }
 0x3e3   :  { %3491 = vmatprep.subr.bf16.mxu0 %v4024_v8  ;;  %3505 = vmatprep.subr.bf16.mxu1 %v3902_v55 }
 0x3e4   :  { %1651 = vmatprep.mubr.f32.mxu0 %v3901_v10  ;;  %3195 = vmatprep.mubr.msk.f32.mxu1 %vm3903_vm0, %v3901_v10 }
 0x3e6   :  { %3493 = vmatpush1.bf16.msra.mxu0 %v4030_v18  ;;  %3507 = vmatpush3.bf16.msra.mxu1 %v4032_v19 }
 0x3e7   :  { %3495 = vmatprep.subr.bf16.mxu0 %v4036_v23  ;;  %3508 = vmatprep.subr.bf16.mxu1 %v3902_v55 }
 0x3ea   :  { %3497 = vmatpush1.bf16.msra.mxu0 %v4043_v32  ;;  %3510 = vmatpush3.bf16.msra.mxu1 %v4045_v33 }
 0x3eb   :  { %3499 = vmatprep.subr.bf16.mxu0 %v4049_v37  ;;  %3511 = vmatprep.subr.bf16.mxu1 %v3902_v55 }
 0x3ee   :  { %3501 = vmatpush1.bf16.msra.mxu0 %v4053_v44  ;;  %3513 = vmatpush3.bf16.msra.mxu1 %v4055_v45 }
 0x3ef   :  { %3515 = vmatprep.subr.bf16.mxu0 %v3943_v6  ;;  %3531 = vmatprep.subr.bf16.mxu1 %v3947_v11 }
 0x3f1   :  { %1652 = vmatmul.mubr.f32.vlgmr.msra.gmra.mrb[14].mxu0 %v1443_v0  ;;  %3196 = vmatmul.mubr.f32.vlgmr.msra.gmra.mrb[14].mxu1 %v1443_v0 }
 0x3f2   :  { %3517 = vmatpush1.bf16.msra.mxu0 %v3949_v12  ;;  %3533 = vmatpush1.bf16.msra.mxu1 %v3952_v16 }
 0x3f3   :  { %3519 = vmatprep.subr.bf16.mxu0 %v3956_v20  ;;  %3535 = vmatprep.subr.bf16.mxu1 %v3958_v21 }
 0x3f4   :  { %1836 = vmatprep.mubr.f32.mxu0 %v3901_v10  ;;  %1907 = vmatprep.mubr.f32.mxu1 %v3901_v10 }
 0x3f6   :  { %3521 = vmatpush1.bf16.msra.mxu0 %v3961_v25  ;;  %3537 = vmatpush1.bf16.msra.mxu1 %v3965_v29 }
 0x3f7   :  { %3523 = vmatprep.subr.bf16.mxu0 %v3967_v30  ;;  %3539 = vmatprep.subr.bf16.mxu1 %v3969_v34 }
 0x3fa   :  { %3525 = vmatpush1.bf16.msra.mxu0 %v3972_v38  ;;  %3541 = vmatpush1.bf16.msra.mxu1 %v3976_v42 }
 0x3fb   :  { %3527 = vmatprep.subr.bf16.mxu0 %v3978_v43  ;;  %3543 = vmatprep.subr.bf16.mxu1 %v3981_v47 }
 0x3fe   :  { %3529 = vmatpush1.bf16.msra.mxu0 %v3984_v52  ;;  %3545 = vmatpush1.bf16.msra.mxu1 %v3988_v53 }
 0x3ff   :  { %3547 = vmatprep.subr.bf16.mxu0 %v3990_v54  ;;  %3562 = vmatprep.subr.bf16.mxu1 %v3902_v55 }
 0x4b4   :  { %v1511_v39 = vpop.f32.mrb[12].mxu0  ;;  %v1582_v61 = vpop.f32.mrb[12].mxu1 }
 0x4b5   :  { %v1750_v62 = vadd.f32 %v1747_v1, %v1511_v39  ;;  %v1513_v46 = vpop.f32.mrb[13].mxu0  ;;  %v1584_v2 = vpop.f32.mrb[13].mxu1  ;;  %v1760_v63 = vadd.f32 %v1582_v61, %v4015_v36  ;;  %v1767_v39 = vrot.slane %v4201_v58, 6 }
 0x4b6   :  { %v1755_v5 = vadd.f32 %v1748_v50, %v1513_v46  ;;  %v1728_v9 = vadd.f32 %v1584_v2, %v4085_v48  ;;  %v1749_v2 = vld [vmem:[#allocation3 + $0x28] sm:$0x3] }
 0x4b7   :  { %v1751_v13 = vmul.f32 0.5, %v1750_v62 }
 0x4b8   :  { %v1756_v14 = vmul.f32 0.5, %v1755_v5  ;;  %v1732_v59 = vmul.f32 0.5, %v1728_v9 }
 0x4b9   :  { %3791 = vtanh.f32 %v1751_v13 }
 0x4ba   :  { %3793 = vtanh.f32 %v1756_v14 }
 0x4bb   :  { %3795 = vtanh.f32 %v1732_v59 }
 0x4c3   :  { %v3792_v22 = vpop.eup %3791 }
 0x4c4   :  { %v3794_v27 = vpop.eup %3793  ;;  %v1753_v24 = vmul.f32 0.5, %v3792_v22  ;;  %v1653_v35 = vpop.f32.mrb[14].mxu0 }
 0x4c5   :  { %v1724_v26 = vpop.f32.mrb[14].mxu1  ;;  %v3796_v7 = vpop.eup %3795  ;;  %v1758_v28 = vmul.f32 0.5, %v3794_v27  ;;  %v1729_v49 = vadd.f32 %v1653_v35, %v4089_v15 }
 0x4c6   :  { %v1655_v60 = vpop.f32.mrb[15].mxu0  ;;  %v3197_v51 = vpop.f32.mrb[15].mxu1  ;;  %v1754_v56 = vadd.f32 0.5, %v1753_v24  ;;  %v1734_v40 = vmul.f32 0.5, %v3796_v7  ;;  %v1731_v46 = vadd.f32 %v1724_v26, %v4091_v17 }
 0x4c7   :  { %v1759_v0 = vadd.f32 0.5, %v1758_v28  ;;  %v1736_v1 = vmul.f32 0.5, %v1729_v49  ;;  %v1730_v14 = vadd.f32 %v1655_v60, %v4095_v31 }
 0x4c8   :  { %v1761_v62 = vmul.f32 %v1760_v63, %v1754_v56  ;;  %v1735_v50 = vadd.f32 0.5, %v1734_v40 }
 0x4c9   :  { %v1769_v5 = vmul.f32 %v1767_v39, %v1759_v0  ;;  %3797 = vtanh.f32 %v1736_v1  ;;  %v1764_v27 = vsub.f32 1.0, %v1759_v0  ;;  %v2074_v1 = vld [vmem:[#allocation3 + $0x18] sm:$0xc] }
 0x4ca   :  { %v1762_v9 = vadd.f32 %v1761_v62, %v1749_v2  ;;  %v1740_v13 = vmul.f32 %v1735_v50, %v1731_v46  ;;  %v2075_v2 = vld [vmem:[#allocation3 + $0x20] sm:$0xc] }
 0x4cc   :  { %3799 = vtanh.f32 %v1762_v9  ;;  %v1741_v59 = vadd.f32 %v1740_v13, %v1730_v14 }
 0x4ce   :  { %3801 = vtanh.f32 %v1741_v59 }
 0x4d3   :  { %v3798_v61 = vpop.eup %3797 }
 0x4d4   :  { %v1738_v22 = vmul.f32 0.5, %v3798_v61 }
 0x4d6   :  { %v3800_v24 = vpop.eup %3799  ;;  %v1739_v58 = vadd.f32 0.5, %v1738_v22 }
 0x4d7   :  { %v1765_v35 = vmul.f32 %v3800_v24, %v1764_v27 }
 0x4d8   :  { %v3802_v7 = vpop.eup %3801  ;;  %v1743_v28 = vsub.f32 1.0, %v1739_v58  ;;  %v1745_v49 = vmul.f32 %v1739_v58, %v4203_v41 }
 0x4d9   :  { %v4250_v26 = vadd.f32 %v1769_v5, %v1765_v35 }
 0x4da   :  { %v1744_v51 = vmul.f32 %v3802_v7, %v1743_v28 }
 0x4dc   :  { %v4253_v56 = vadd.f32 %v1745_v49, %v1744_v51 }
 0x4de   :  { %v1771_v60 = vadd.f32 %v4250_v26, %v4253_v56 }
 0x4e0   :  { %1837 = vmatmul.mubr.f32.vlgmr.msra.gmra.mrb[16].mxu0 %v1771_v60  ;;  %1908 = vmatmul.mubr.f32.vlgmr.msra.gmra.mrb[16].mxu1 %v1771_v60 }
 0x4e1   :  { %3549 = vmatpush1.bf16.msra.mxu0 %v4018_v3  ;;  %3564 = vmatpush3.bf16.msra.mxu1 %v4020_v4 }
 0x4e2   :  { %3551 = vmatprep.subr.bf16.mxu0 %v4024_v8  ;;  %3565 = vmatprep.subr.bf16.mxu1 %v3902_v55 }
 0x4e3   :  { %1978 = vmatprep.mubr.f32.mxu0 %v3901_v10  ;;  %3214 = vmatprep.mubr.msk.f32.mxu1 %vm3903_vm0, %v3901_v10 }
 0x4e5   :  { %3553 = vmatpush1.bf16.msra.mxu0 %v4030_v18  ;;  %3567 = vmatpush3.bf16.msra.mxu1 %v4032_v19 }
 0x4e6   :  { %3555 = vmatprep.subr.bf16.mxu0 %v4036_v23  ;;  %3568 = vmatprep.subr.bf16.mxu1 %v3902_v55 }
 0x4e9   :  { %3557 = vmatpush1.bf16.msra.mxu0 %v4043_v32  ;;  %3570 = vmatpush3.bf16.msra.mxu1 %v4045_v33 }
 0x4ea   :  { %3559 = vmatprep.subr.bf16.mxu0 %v4049_v37  ;;  %3571 = vmatprep.subr.bf16.mxu1 %v3902_v55 }
 0x4ed   :  { %3561 = vmatpush1.bf16.msra.mxu0 %v4053_v44  ;;  %3573 = vmatpush3.bf16.msra.mxu1 %v4055_v45 }
 0x4ee   :  { %3575 = vmatprep.subr.bf16.mxu0 %v3943_v6  ;;  %3591 = vmatprep.subr.bf16.mxu1 %v3947_v11 }
 0x4f0   :  { %1979 = vmatmul.mubr.f32.vlgmr.msra.gmra.mrb[18].mxu0 %v1771_v60  ;;  %3215 = vmatmul.mubr.f32.vlgmr.msra.gmra.mrb[18].mxu1 %v1771_v60 }
 0x4f1   :  { %3577 = vmatpush1.bf16.msra.mxu0 %v3949_v12  ;;  %3593 = vmatpush1.bf16.msra.mxu1 %v3952_v16 }
 0x4f2   :  { %3579 = vmatprep.subr.bf16.mxu0 %v3956_v20  ;;  %3595 = vmatprep.subr.bf16.mxu1 %v3958_v21 }
 0x4f3   :  { %2178 = vmatprep.mubr.f32.mxu0 %v3901_v10  ;;  %2249 = vmatprep.mubr.f32.mxu1 %v3901_v10 }
 0x4f5   :  { %3581 = vmatpush1.bf16.msra.mxu0 %v3961_v25  ;;  %3597 = vmatpush1.bf16.msra.mxu1 %v3965_v29 }
 0x4f6   :  { %3583 = vmatprep.subr.bf16.mxu0 %v3967_v30  ;;  %3599 = vmatprep.subr.bf16.mxu1 %v3969_v34 }
 0x4f9   :  { %3585 = vmatpush1.bf16.msra.mxu0 %v3972_v38  ;;  %3601 = vmatpush1.bf16.msra.mxu1 %v3976_v42 }
 0x4fa   :  { %3587 = vmatprep.subr.bf16.mxu0 %v3978_v43  ;;  %3603 = vmatprep.subr.bf16.mxu1 %v3981_v47 }
 0x4fd   :  { %3589 = vmatpush1.bf16.msra.mxu0 %v3984_v52  ;;  %3605 = vmatpush1.bf16.msra.mxu1 %v3988_v53 }
 0x4fe   :  { %3607 = vmatprep.subr.bf16.mxu0 %v3990_v54  ;;  %3622 = vmatprep.subr.bf16.mxu1 %v3902_v55 }
 0x5b3   :  { %v1838_v41 = vpop.f32.mrb[16].mxu0  ;;  %v1909_v63 = vpop.f32.mrb[16].mxu1 }
 0x5b4   :  { %v2078_v40 = vrot.slane %v1838_v41, 6  ;;  %v1840_v0 = vpop.f32.mrb[17].mxu0  ;;  %v1911_v39 = vpop.f32.mrb[17].mxu1  ;;  %v2093_v61 = vadd.f32 %v1909_v63, %v4015_v36 }
 0x5b5   :  { %v2086_v62 = vrot.slane %v1840_v0, 6  ;;  %v2055_v46 = vadd.f32 %v1911_v39, %v4085_v48 }
 0x5b6   :  { %v2080_v50 = vadd.f32 %v2078_v40, %v2074_v1  ;;  %v2095_v1 = vrot.slane %v2093_v61, 6 }
 0x5b7   :  { %v2088_v5 = vadd.f32 %v2086_v62, %v2075_v2  ;;  %v2059_v9 = vmul.f32 0.5, %v2055_v46  ;;  %v2103_v62 = vrot.slane %v4250_v26, 6 }
 0x5b8   :  { %v2081_v13 = vmul.f32 0.5, %v2080_v50 }
 0x5b9   :  { %v2089_v14 = vmul.f32 0.5, %v2088_v5  ;;  %3803 = vtanh.f32 %v2059_v9  ;;  %v2076_v5 = vld [vmem:[#allocation3 + $0x28] sm:$0xc] }
 0x5ba   :  { %3805 = vtanh.f32 %v2081_v13 }
 0x5bb   :  { %3807 = vtanh.f32 %v2089_v14 }
 0x5c3   :  { %v3804_v59 = vpop.eup %3803  ;;  %v1980_v22 = vpop.f32.mrb[18].mxu0 }
 0x5c4   :  { %v2051_v27 = vpop.f32.mrb[18].mxu1  ;;  %v3806_v24 = vpop.eup %3805  ;;  %v2061_v58 = vmul.f32 0.5, %v3804_v59  ;;  %v2056_v35 = vadd.f32 %v1980_v22, %v4089_v15 }
 0x5c5   :  { %v1982_v7 = vpop.f32.mrb[19].mxu0  ;;  %v3216_v28 = vpop.f32.mrb[19].mxu1  ;;  %v2083_v51 = vmul.f32 0.5, %v3806_v24  ;;  %v2058_v40 = vadd.f32 %v2051_v27, %v4091_v17 }
 0x5c6   :  { %v3808_v49 = vpop.eup %3807  ;;  %v2063_v41 = vmul.f32 0.5, %v2056_v35  ;;  %v2062_v0 = vadd.f32 0.5, %v2061_v58  ;;  %v2057_v50 = vadd.f32 %v1982_v7, %v4095_v31 }
 0x5c7   :  { %v2091_v60 = vmul.f32 0.5, %v3808_v49  ;;  %v2084_v39 = vadd.f32 0.5, %v2083_v51 }
 0x5c8   :  { %3809 = vtanh.f32 %v2063_v41  ;;  %v2067_v46 = vmul.f32 %v2062_v0, %v2058_v40 }
 0x5c9   :  { %v2092_v63 = vadd.f32 0.5, %v2091_v60  ;;  %v2097_v2 = vmul.f32 %v2095_v1, %v2084_v39  ;;  %v2417_v39 = vld [vmem:[#allocation3 + $0x20] sm:$0x30] }
 0x5ca   :  { %v2068_v13 = vadd.f32 %v2067_v46, %v2057_v50 }
 0x5cb   :  { %v2105_v9 = vmul.f32 %v2103_v62, %v2092_v63  ;;  %v2098_v14 = vadd.f32 %v2097_v2, %v2076_v5  ;;  %v2100_v58 = vsub.f32 1.0, %v2092_v63 }
 0x5cc   :  { %3811 = vtanh.f32 %v2068_v13 }
 0x5cd   :  { %3813 = vtanh.f32 %v2098_v14 }
 0x5d2   :  { %v3810_v59 = vpop.eup %3809 }
 0x5d3   :  { %v2065_v22 = vmul.f32 0.5, %v3810_v59 }
 0x5d5   :  { %v2066_v27 = vadd.f32 0.5, %v2065_v22 }
 0x5d6   :  { %v3812_v24 = vpop.eup %3811 }
 0x5d7   :  { %v3814_v61 = vpop.eup %3813  ;;  %v2070_v35 = vsub.f32 1.0, %v2066_v27  ;;  %v2072_v28 = vmul.f32 %v2066_v27, %v4253_v56 }
 0x5d8   :  { %v2101_v26 = vmul.f32 %v3814_v61, %v2100_v58 }
 0x5d9   :  { %v2071_v49 = vmul.f32 %v3812_v24, %v2070_v35 }
 0x5da   :  { %v4301_v51 = vadd.f32 %v2105_v9, %v2101_v26 }
 0x5db   :  { %v4303_v7 = vadd.f32 %v2072_v28, %v2071_v49 }
 0x5dd   :  { %v2108_v60 = vrot.slane %v4303_v7, 6 }
 0x5df   :  { %v2110_v41 = vadd.f32 %v2108_v60, %v4301_v51  ;;  %v2445_v60 = vrot.slane %v4301_v51, 6 }
 0x5e1   :  { %v2112_v40 = vrot.slane %v2110_v41, 2 }
 0x5e3   :  { %2179 = vmatmul.mubr.f32.vlgmr.msra.gmra.mrb[20].mxu0 %v2112_v40  ;;  %2250 = vmatmul.mubr.f32.vlgmr.msra.gmra.mrb[20].mxu1 %v2112_v40 }
 0x5e4   :  { %3609 = vmatpush1.bf16.msra.mxu0 %v4018_v3  ;;  %3624 = vmatpush3.bf16.msra.mxu1 %v4020_v4 }
 0x5e5   :  { %3611 = vmatprep.subr.bf16.mxu0 %v4024_v8  ;;  %3625 = vmatprep.subr.bf16.mxu1 %v3902_v55 }
 0x5e6   :  { %2320 = vmatprep.mubr.f32.mxu0 %v3901_v10  ;;  %3233 = vmatprep.mubr.msk.f32.mxu1 %vm3903_vm0, %v3901_v10 }
 0x5e8   :  { %3613 = vmatpush1.bf16.msra.mxu0 %v4030_v18  ;;  %3627 = vmatpush3.bf16.msra.mxu1 %v4032_v19 }
 0x5e9   :  { %3615 = vmatprep.subr.bf16.mxu0 %v4036_v23  ;;  %3628 = vmatprep.subr.bf16.mxu1 %v3902_v55 }
 0x5ec   :  { %3617 = vmatpush1.bf16.msra.mxu0 %v4043_v32  ;;  %3630 = vmatpush3.bf16.msra.mxu1 %v4045_v33 }
 0x5ed   :  { %3619 = vmatprep.subr.bf16.mxu0 %v4049_v37  ;;  %3631 = vmatprep.subr.bf16.mxu1 %v3902_v55 }
 0x5f0   :  { %3621 = vmatpush1.bf16.msra.mxu0 %v4053_v44  ;;  %3633 = vmatpush3.bf16.msra.mxu1 %v4055_v45 }
 0x5f1   :  { %3635 = vmatprep.subr.bf16.mxu0 %v3943_v6  ;;  %3651 = vmatprep.subr.bf16.mxu1 %v3947_v11 }
 0x5f3   :  { %2321 = vmatmul.mubr.f32.vlgmr.msra.gmra.mrb[22].mxu0 %v2112_v40  ;;  %3234 = vmatmul.mubr.f32.vlgmr.msra.gmra.mrb[22].mxu1 %v2112_v40 }
 0x5f4   :  { %3637 = vmatpush1.bf16.msra.mxu0 %v3949_v12  ;;  %3653 = vmatpush1.bf16.msra.mxu1 %v3952_v16 }
 0x5f5   :  { %3639 = vmatprep.subr.bf16.mxu0 %v3956_v20  ;;  %3655 = vmatprep.subr.bf16.mxu1 %v3958_v21 }
 0x5f6   :  { %2520 = vmatprep.mubr.f32.mxu0 %v3901_v10  ;;  %2591 = vmatprep.mubr.f32.mxu1 %v3901_v10 }
 0x5f8   :  { %3641 = vmatpush1.bf16.msra.mxu0 %v3961_v25  ;;  %3657 = vmatpush1.bf16.msra.mxu1 %v3965_v29 }
 0x5f9   :  { %3643 = vmatprep.subr.bf16.mxu0 %v3967_v30  ;;  %3659 = vmatprep.subr.bf16.mxu1 %v3969_v34 }
 0x5fc   :  { %3645 = vmatpush1.bf16.msra.mxu0 %v3972_v38  ;;  %3661 = vmatpush1.bf16.msra.mxu1 %v3976_v42  ;;  %v2416_v38 = vld [vmem:[#allocation3 + $0x18] sm:$0x30] }
 0x5fd   :  { %3647 = vmatprep.subr.bf16.mxu0 %v3978_v43  ;;  %3663 = vmatprep.subr.bf16.mxu1 %v3981_v47 }
 0x600   :  { %3649 = vmatpush1.bf16.msra.mxu0 %v3984_v52  ;;  %3665 = vmatpush1.bf16.msra.mxu1 %v3988_v53 }
 0x601   :  { %3667 = vmatprep.subr.bf16.mxu0 %v3990_v54  ;;  %3682 = vmatprep.subr.bf16.mxu1 %v3902_v55 }
 0x6b6   :  { %v2180_v6 = vpop.f32.mrb[20].mxu0  ;;  %v2251_v12 = vpop.f32.mrb[20].mxu1 }
 0x6b7   :  { %v2420_v20 = vrot.slane %v2180_v6, 4  ;;  %v2182_v25 = vpop.f32.mrb[21].mxu0  ;;  %v2253_v30 = vpop.f32.mrb[21].mxu1  ;;  %v2435_v50 = vadd.f32 %v2251_v12, %v4015_v36 }
 0x6b8   :  { %v2428_v56 = vrot.slane %v2182_v25, 4  ;;  %v2397_v0 = vadd.f32 %v2253_v30, %v4085_v48 }
 0x6b9   :  { %v2422_v43 = vadd.f32 %v2420_v20, %v2416_v38  ;;  %v2437_v49 = vrot.slane %v2435_v50, 4  ;;  %v2418_v20 = vld [vmem:[#allocation3 + $0x28] sm:$0x30] }
 0x6ba   :  { %v2430_v1 = vadd.f32 %v2428_v56, %v2417_v39  ;;  %v2401_v62 = vmul.f32 0.5, %v2397_v0 }
 0x6bb   :  { %v2423_v52 = vmul.f32 0.5, %v2422_v43 }
 0x6bc   :  { %v2431_v63 = vmul.f32 0.5, %v2430_v1  ;;  %3815 = vtanh.f32 %v2401_v62 }
 0x6bd   :  { %3817 = vtanh.f32 %v2423_v52 }
 0x6be   :  { %3819 = vtanh.f32 %v2431_v63 }
 0x6c6   :  { %v3816_v46 = vpop.eup %3815  ;;  %v2322_v2 = vpop.f32.mrb[22].mxu0 }
 0x6c7   :  { %v2393_v5 = vpop.f32.mrb[22].mxu1  ;;  %v3818_v9 = vpop.eup %3817  ;;  %v2403_v13 = vmul.f32 0.5, %v3816_v46  ;;  %v2398_v14 = vadd.f32 %v2322_v2, %v4089_v15 }
 0x6c8   :  { %v2324_v59 = vpop.f32.mrb[23].mxu0  ;;  %v3235_v22 = vpop.f32.mrb[23].mxu1  ;;  %v2425_v24 = vmul.f32 0.5, %v3818_v9  ;;  %v2400_v35 = vadd.f32 %v2393_v5, %v4091_v17 }
 0x6c9   :  { %v3820_v27 = vpop.eup %3819  ;;  %v2405_v61 = vmul.f32 0.5, %v2398_v14  ;;  %v2404_v26 = vadd.f32 0.5, %v2403_v13  ;;  %v2399_v6 = vadd.f32 %v2324_v59, %v4095_v31 }
 0x6ca   :  { %v2433_v58 = vmul.f32 0.5, %v3820_v27  ;;  %v2426_v28 = vadd.f32 0.5, %v2425_v24 }
 0x6cb   :  { %3821 = vtanh.f32 %v2405_v61  ;;  %v2409_v40 = vmul.f32 %v2404_v26, %v2400_v35 }
 0x6cc   :  { %v2434_v41 = vadd.f32 0.5, %v2433_v58  ;;  %v2439_v12 = vmul.f32 %v2437_v49, %v2426_v28 }
 0x6cd   :  { %v2410_v30 = vadd.f32 %v2409_v40, %v2399_v6 }
 0x6ce   :  { %v2447_v25 = vmul.f32 %v2445_v60, %v2434_v41  ;;  %v2440_v38 = vadd.f32 %v2439_v12, %v2418_v20  ;;  %v2442_v1 = vsub.f32 1.0, %v2434_v41 }
 0x6cf   :  { %3823 = vtanh.f32 %v2410_v30  ;;  %v2760_v30 = vld [vmem:[#allocation3 + $0x28] sm:$0xc0] }
 0x6d0   :  { %3825 = vtanh.f32 %v2440_v38 }
 0x6d5   :  { %v3822_v56 = vpop.eup %3821 }
 0x6d6   :  { %v2407_v0 = vmul.f32 0.5, %v3822_v56 }
 0x6d8   :  { %v2408_v43 = vadd.f32 0.5, %v2407_v0 }
 0x6d9   :  { %v3824_v39 = vpop.eup %3823 }
 0x6da   :  { %v3826_v62 = vpop.eup %3825  ;;  %v2412_v52 = vsub.f32 1.0, %v2408_v43  ;;  %v2414_v63 = vmul.f32 %v2408_v43, %v4303_v7 }
 0x6db   :  { %v2443_v51 = vmul.f32 %v3826_v62, %v2442_v1 }
 0x6dc   :  { %v2413_v46 = vmul.f32 %v3824_v39, %v2412_v52 }
 0x6dd   :  { %v4351_v50 = vadd.f32 %v2447_v25, %v2443_v51 }
 0x6de   :  { %v4353_v2 = vadd.f32 %v2414_v63, %v2413_v46 }
 0x6df   :  { %v2787_v6 = vrot.slane %v4351_v50, 6 }
 0x6e0   :  { %v2450_v5 = vrot.slane %v4353_v2, 4 }
 0x6e2   :  { %v2452_v9 = vadd.f32 %v2450_v5, %v4351_v50 }
 0x6e4   :  { %v2454_v13 = vrot.slane %v2452_v9, 4 }
 0x6e6   :  { %2521 = vmatmul.mubr.f32.vlgmr.msra.gmra.mrb[24].mxu0 %v2454_v13  ;;  %2592 = vmatmul.mubr.f32.vlgmr.msra.gmra.mrb[24].mxu1 %v2454_v13 }
 0x6e7   :  { %3669 = vmatpush1.bf16.msra.mxu0 %v4018_v3  ;;  %3684 = vmatpush3.bf16.msra.mxu1 %v4020_v4 }
 0x6e8   :  { %3671 = vmatprep.subr.bf16.mxu0 %v4024_v8  ;;  %3685 = vmatprep.subr.bf16.mxu1 %v3902_v55 }
 0x6e9   :  { %2662 = vmatprep.mubr.f32.mxu0 %v3901_v10  ;;  %3252 = vmatprep.mubr.msk.f32.mxu1 %vm3903_vm0, %v3901_v10 }
 0x6eb   :  { %3673 = vmatpush1.bf16.msra.mxu0 %v4030_v18  ;;  %3687 = vmatpush3.bf16.msra.mxu1 %v4032_v19 }
 0x6ec   :  { %3675 = vmatprep.subr.bf16.mxu0 %v4036_v23  ;;  %3688 = vmatprep.subr.bf16.mxu1 %v3902_v55 }
 0x6ef   :  { %3677 = vmatpush1.bf16.msra.mxu0 %v4043_v32  ;;  %3690 = vmatpush3.bf16.msra.mxu1 %v4045_v33 }
 0x6f0   :  { %3679 = vmatprep.subr.bf16.mxu0 %v4049_v37  ;;  %3691 = vmatprep.subr.bf16.mxu1 %v3902_v55 }
 0x6f3   :  { %3681 = vmatpush1.bf16.msra.mxu0 %v4053_v44  ;;  %3693 = vmatpush3.bf16.msra.mxu1 %v4055_v45 }
 0x6f4   :  { %3695 = vmatprep.subr.bf16.mxu0 %v3947_v11  ;;  %3711 = vmatprep.subr.bf16.mxu1 %v3990_v54  ;;  %v2758_v54 = vld [vmem:[#allocation3 + $0x18] sm:$0xc0] }
 0x6f6   :  { %2663 = vmatmul.mubr.f32.vlgmr.msra.gmra.mrb[26].mxu0 %v2454_v13  ;;  %3253 = vmatmul.mubr.f32.vlgmr.msra.gmra.mrb[26].mxu1 %v2454_v13 }
 0x6f7   :  { %3697 = vmatpush1.bf16.msra.mxu0 %v3952_v16  ;;  %3713 = vmatpush1.bf16.msra.mxu1 %v4018_v3 }
 0x6f8   :  { %3699 = vmatprep.subr.bf16.mxu0 %v3958_v21  ;;  %3715 = vmatprep.subr.bf16.mxu1 %v4024_v8 }
 0x6f9   :  { %2862 = vmatprep.mubr.f32.mxu0 %v3901_v10  ;;  %2932 = vmatprep.mubr.f32.mxu1 %v3901_v10 }
 0x6fb   :  { %3701 = vmatpush1.bf16.msra.mxu0 %v3965_v29  ;;  %3717 = vmatpush1.bf16.msra.mxu1 %v4030_v18  ;;  %v2759_v18 = vld [vmem:[#allocation3 + $0x20] sm:$0xc0] }
 0x6fc   :  { %3703 = vmatprep.subr.bf16.mxu0 %v3969_v34  ;;  %3719 = vmatprep.subr.bf16.mxu1 %v4036_v23 }
 0x6ff   :  { %3705 = vmatpush1.bf16.msra.mxu0 %v3976_v42  ;;  %3721 = vmatpush1.bf16.msra.mxu1 %v4043_v32 }
 0x700   :  { %3707 = vmatprep.subr.bf16.mxu0 %v3981_v47  ;;  %3723 = vmatprep.subr.bf16.mxu1 %v4049_v37 }
 0x703   :  { %3709 = vmatpush1.bf16.msra.mxu0 %v3988_v53  ;;  %3725 = vmatpush1.bf16.msra.mxu1 %v4053_v44 }
 0x704   :  { %3726 = vmatprep.subr.bf16.mxu0 %v3902_v55 }
 0x7b9   :  { %v2522_v11 = vpop.f32.mrb[24].mxu0  ;;  %v2593_v16 = vpop.f32.mrb[24].mxu1 }
 0x7ba   :  { %v2762_v21 = vrot.slane %v2522_v11, 2  ;;  %v2524_v29 = vpop.f32.mrb[25].mxu0  ;;  %v2595_v34 = vpop.f32.mrb[25].mxu1  ;;  %v2777_v44 = vadd.f32 %v2593_v16, %v4015_v36 }
 0x7bb   :  { %v2770_v3 = vrot.slane %v2524_v29, 2  ;;  %v2739_v42 = vadd.f32 %v2595_v34, %v4085_v48 }
 0x7bc   :  { %v2764_v8 = vadd.f32 %v2762_v21, %v2758_v54  ;;  %v2779_v40 = vrot.slane %v2777_v44, 2 }
 0x7bd   :  { %v2772_v47 = vadd.f32 %v2770_v3, %v2759_v18  ;;  %v2743_v23 = vmul.f32 0.5, %v2739_v42 }
 0x7be   :  { %v2765_v32 = vmul.f32 0.5, %v2764_v8 }
 0x7bf   :  { %v2773_v37 = vmul.f32 0.5, %v2772_v47  ;;  %3827 = vtanh.f32 %v2743_v23 }
 0x7c0   :  { %3829 = vtanh.f32 %v2765_v32 }
 0x7c1   :  { %3831 = vtanh.f32 %v2773_v37 }
 0x7c9   :  { %v3828_v53 = vpop.eup %3827  ;;  %v2664_v7 = vpop.f32.mrb[26].mxu0 }
 0x7ca   :  { %v2735_v14 = vpop.f32.mrb[26].mxu1  ;;  %v3830_v59 = vpop.eup %3829  ;;  %v2745_v22 = vmul.f32 0.5, %v3828_v53  ;;  %v2740_v27 = vadd.f32 %v2664_v7, %v4089_v15 }
 0x7cb   :  { %v2666_v24 = vpop.f32.mrb[27].mxu0  ;;  %v3254_v58 = vpop.f32.mrb[27].mxu1  ;;  %v2767_v35 = vmul.f32 0.5, %v3830_v59  ;;  %v2742_v49 = vadd.f32 %v2735_v14, %v4091_v17 }
 0x7cc   :  { %v3832_v61 = vpop.eup %3831  ;;  %v2747_v28 = vmul.f32 0.5, %v2740_v27  ;;  %v2746_v60 = vadd.f32 0.5, %v2745_v22  ;;  %v2741_v20 = vadd.f32 %v2666_v24, %v4095_v31  ;;  %v3845_v22 = vld [vmem:[#allocation6] sm:$0xff] }
 0x7cd   :  { %v2775_v26 = vmul.f32 0.5, %v3832_v61  ;;  %v2768_v41 = vadd.f32 0.5, %v2767_v35 }
 0x7ce   :  { %3833 = vtanh.f32 %v2747_v28  ;;  %v2751_v12 = vmul.f32 %v2746_v60, %v2742_v49 }
 0x7cf   :  { %v2776_v36 = vadd.f32 0.5, %v2775_v26  ;;  %v2781_v25 = vmul.f32 %v2779_v40, %v2768_v41 }
 0x7d0   :  { %v2752_v56 = vadd.f32 %v2751_v12, %v2741_v20 }
 0x7d1   :  { %v2789_v38 = vmul.f32 %v2787_v6, %v2776_v36  ;;  %v2782_v0 = vadd.f32 %v2781_v25, %v2760_v30  ;;  %v2784_v52 = vsub.f32 1.0, %v2776_v36 }
 0x7d2   :  { %3835 = vtanh.f32 %v2752_v56 }
 0x7d3   :  { %3837 = vtanh.f32 %v2782_v0 }
 0x7d8   :  { %v3834_v43 = vpop.eup %3833 }
 0x7d9   :  { %v2749_v39 = vmul.f32 0.5, %v3834_v43 }
 0x7db   :  { %v2750_v1 = vadd.f32 0.5, %v2749_v39 }
 0x7dc   :  { %v3836_v62 = vpop.eup %3835 }
 0x7dd   :  { %v3838_v51 = vpop.eup %3837  ;;  %v2754_v63 = vsub.f32 1.0, %v2750_v1  ;;  %v2756_v50 = vmul.f32 %v2750_v1, %v4353_v2 }
 0x7de   :  { %v2785_v46 = vmul.f32 %v3838_v51, %v2784_v52 }
 0x7df   :  { %v2755_v5 = vmul.f32 %v3836_v62, %v2754_v63 }
 0x7e0   :  { %v2790_v9 = vadd.f32 %v2789_v38, %v2785_v46 }
 0x7e1   :  { %v2757_v13 = vadd.f32 %v2756_v50, %v2755_v5 }
 0x7e3   :  { %v2792_v11 = vrot.slane %v2757_v13, 2 }
 0x7e5   :  { %v2794_v16 = vadd.f32 %v2792_v11, %v2790_v9 }
 0x7e7   :  { %v2796_v21 = vrot.slane %v2794_v16, 6 }
 0x7e9   :  { %2863 = vmatmul.mubr.f32.vlgmr.msra.gmra.mrb[28].mxu0 %v2796_v21  ;;  %2933 = vmatmul.mubr.f32.vlgmr.msra.gmra.mrb[28].mxu1 %v2796_v21 }
 0x7ea   :  { %3728 = vmatpush3.bf16.msra.mxu0 %v4020_v4  ;;  %3271 = vmatprep.mubr.msk.f32.mxu0 %vm3903_vm0, %v3901_v10 }
 0x7eb   :  { %3729 = vmatprep.subr.bf16.mxu0 %v3902_v55 }
 0x7ee   :  { %3731 = vmatpush3.bf16.msra.mxu0 %v4032_v19 }
 0x7ef   :  { %3732 = vmatprep.subr.bf16.mxu0 %v3902_v55 }
 0x7f2   :  { %3734 = vmatpush3.bf16.msra.mxu0 %v4045_v33 }
 0x7f3   :  { %3735 = vmatprep.subr.bf16.mxu0 %v3902_v55 }
 0x7f6   :  { %3737 = vmatpush3.bf16.msra.mxu0 %v4055_v45 }
 0x7f9   :  { %3272 = vmatmul.mubr.f32.vlgmr.msra.gmra.mrb[30].mxu0 %v2796_v21 }
 0x8bc   :  { %v2864_v2 = vpop.f32.mrb[28].mxu0  ;;  %v2934_v29 = vpop.f32.mrb[28].mxu1 }
 0x8bd   :  { %v2865_v34 = vpop.f32.mrb[29].mxu0  ;;  %v2936_v4 = vpop.f32.mrb[29].mxu1  ;;  %v3010_v3 = vadd.f32 %v2934_v29, %v4089_v15  ;;  %v3030_v15 = vsub.s32 4, %v3997_v57 }
 0x8be   :  { %v3009_v54 = vadd.f32 %v2865_v34, %v4085_v48  ;;  %v3011_v47 = vadd.f32 %v2936_v4, %v4095_v31  ;;  %v3039_v31 = vsub.s32 5, %v3997_v57 }
 0x8bf   :  { %v3017_v19 = vmul.f32 0.5, %v3010_v3  ;;  %v3031_v27 = vrot.slane %v3845_v22, %v3030_v15 }
 0x8c0   :  { %v3013_v10 = vmul.f32 0.5, %v3009_v54  ;;  %v3040_v61 = vrot.slane %v3845_v22, %v3039_v31 }
 0x8c2   :  { %3839 = vtanh.f32 %v3013_v10 }
 0x8c3   :  { %3841 = vtanh.f32 %v3017_v19 }
 0x8cc   :  { %v3840_v42 = vpop.eup %3839  ;;  %v3005_v8 = vpop.f32.mrb[30].mxu0 }
 0x8cd   :  { %v3015_v33 = vmul.f32 0.5, %v3840_v42  ;;  %v3273_v18 = vpop.f32.mrb[31].mxu0  ;;  %v3012_v55 = vadd.f32 %v3005_v8, %v4091_v17  ;;  %v3842_v32 = vpop.eup %3841 }
 0x8ce   :  { %v3019_v48 = vmul.f32 0.5, %v3842_v32 }
 0x8cf   :  { %v3016_v45 = vadd.f32 0.5, %v3015_v33 }
 0x8d0   :  { %v3020_v53 = vadd.f32 0.5, %v3019_v48 }
 0x8d1   :  { %v3021_v23 = vmul.f32 %v3016_v45, %v3012_v55 }
 0x8d2   :  { %v3024_v44 = vsub.f32 1.0, %v3020_v53  ;;  %v3026_v59 = vmul.f32 %v3020_v53, %v2757_v13 }
 0x8d3   :  { %v3022_v37 = vadd.f32 %v3021_v23, %v3011_v47 }
 0x8d5   :  { %3843 = vtanh.f32 %v3022_v37 }
 0x8df   :  { %v3844_v7 = vpop.eup %3843 }
 0x8e0   :  { %v3025_v14 = vmul.f32 %v3844_v7, %v3024_v44 }
 0x8e2   :  { %v3027_v24 = vadd.f32 %v3026_v59, %v3025_v14 }
 0x8e4   :  { %v3032_v17 = vmul.f32 %v3031_v27, %v3027_v24 }
 0x8e6   :  { %v3034_v58 = vsel %vm3033_vm1, %v3032_v17, 0.0 }
 0x8e7   :  { %3035 = vadd.xlane.f32.xlu1 %v3034_v58 }
 0x974   :  { %v3036_v35 = vpop.xlane.xlu1 %3035 }
 0x975   :  { %v3041_v26 = vadd.f32 %v3040_v61, %v3036_v35 }
 0x977   :  { %3043 = vst.msk [vmem:[%s4420_s2] sm:$0x3] %vm3042_vm2, %v3041_v26 }
 0x978   :  { %3048 = vsyncpa [#allocation5], 1 }
 0x979   :  { %3049 = vsyncpa [#allocation7], 1 }

</bundles_post_ra>
